<compile_context>
chip_gen: v7x
topology: tpu7x:2x2x1
jax: 0.10.0
libtpu: 0.0.40
codegen_flags: <defaults>
</compile_context>

<pallas_src>
import functools
import math

import jax
import jax.numpy as jnp
from jax import lax
from jax.experimental import pallas as pl
from jax.experimental.pallas import tpu as pltpu


# ----------------------------------------------------------------------------- kernel

def _encoder_kernel(
    x0_ref, eg_ref, eb_ref,                 # embedding-sum slab + embedding LN params
    wqkv_ref, bqkv_ref,                     # fused QKV weights (L,H,3H) / (L,1,3H)
    wo_ref, bo_ref,                         # attention out-proj
    ln1g_ref, ln1b_ref,                     # post-attention LN
    w1_ref, b1_ref, w2_ref, b2_ref,         # FFN
    ln2g_ref, ln2b_ref,                     # post-FFN LN
    pw_ref, pb_ref,                         # final CLS projection (H,E)/(1,E)
    feat_ref,                               # output (B, E)
    x_scr,                                  # VMEM scratch: resident activations (B*S, H)
    *, B, S, nH, dH, eps, scale,
):
    l = pl.program_id(0)
    L = pl.num_programs(0)
    H = nH * dH

    def layernorm(h, g, b):
        mu = jnp.mean(h, axis=-1, keepdims=True)
        var = jnp.mean((h - mu) ** 2, axis=-1, keepdims=True)
        return (h - mu) * lax.rsqrt(var + eps) * g + b

    # ---- first grid step: embedding LayerNorm into the resident slab ----------------
    @pl.when(l == 0)
    def _():
        x_scr[...] = layernorm(x0_ref[...], eg_ref[...], eb_ref[...])
        feat_ref[...] = jnp.zeros_like(feat_ref)

    x = x_scr[...]                                  # (B*S, H) f32, VMEM-resident
    xb = x.astype(jnp.bfloat16)

    # ---- fused QKV projection --------------------------------------------------------
    qkv = jnp.dot(xb, wqkv_ref[0], preferred_element_type=jnp.float32) + bqkv_ref[0]

    # ---- multi-head softmax attention (head split/merge in-kernel) -------------------
    ctx_rows = []
    for b in range(B):                              # static Python loops (tiny B, nH)
        r0 = b * S
        head_ctx = []
        for hd in range(nH):
            c0 = hd * dH
            q_bh = qkv[r0:r0 + S, c0:c0 + dH]
            k_bh = qkv[r0:r0 + S, H + c0:H + c0 + dH]
            v_bh = qkv[r0:r0 + S, 2 * H + c0:2 * H + c0 + dH]
            s = lax.dot_general(
                q_bh.astype(jnp.bfloat16), k_bh.astype(jnp.bfloat16),
                dimension_numbers=(((1,), (1,)), ((), ())),
                preferred_element_type=jnp.float32) * scale
            m = jnp.max(s, axis=-1, keepdims=True)
            p = jnp.exp(s - m)
            p = p * pl.reciprocal(jnp.sum(p, axis=-1, keepdims=True), approx=True)
            ctx_bh = jnp.dot(p.astype(jnp.bfloat16), v_bh.astype(jnp.bfloat16),
                             preferred_element_type=jnp.float32)
            head_ctx.append(ctx_bh)
        ctx_rows.append(jnp.concatenate(head_ctx, axis=-1))     # (S, H)
    ctx = jnp.concatenate(ctx_rows, axis=0)                      # (B*S, H)

    # ---- out-proj + residual + LN1 (fused) --------------------------------------------
    attn_out = jnp.dot(ctx.astype(jnp.bfloat16), wo_ref[0],
                       preferred_element_type=jnp.float32) + bo_ref[0]
    x1 = layernorm(x + attn_out, ln1g_ref[0], ln1b_ref[0])

    # ---- FFN (erf GELU, matching BERT) + residual + LN2 (fused) ------------------------
    hmid = jnp.dot(x1.astype(jnp.bfloat16), w1_ref[0],
                   preferred_element_type=jnp.float32) + b1_ref[0]
    hmid = 0.5 * hmid * (1.0 + lax.erf(hmid * (1.0 / math.sqrt(2.0))))
    ffn = jnp.dot(hmid.astype(jnp.bfloat16), w2_ref[0],
                  preferred_element_type=jnp.float32) + b2_ref[0]
    x2 = layernorm(x1 + ffn, ln2g_ref[0], ln2b_ref[0])

    x_scr[...] = x2

    # ---- last layer: take CLS row of each sequence and project (fused) ----------------
    @pl.when(l == L - 1)
    def _():
        cls = jnp.concatenate([x2[b * S:b * S + 1, :] for b in range(B)], axis=0)  # (B,H)
        feat_ref[...] = (jnp.dot(cls.astype(jnp.bfloat16), pw_ref[...],
                                 preferred_element_type=jnp.float32)
                         + pb_ref[...]).astype(feat_ref.dtype)


# ----------------------------------------------------------------------------- model

CFG = dict(
    vocab=100,
    max_pos=16,
    type_vocab=2,
    hidden=32,
    heads=2,
    layers=2,
    intermediate=64,
    embedding_dim=24,   # output dim of TextEncoder.linear
)


def init_params(key, cfg):
    H = cfg["hidden"]
    I = cfg["intermediate"]
    E = cfg["embedding_dim"]
    L = cfg["layers"]

    def dense(k, fan_in, fan_out):
        # weight stored as (in, out) == PyTorch W.T ; bias as (1, out)
        kw, kb = jax.random.split(k)
        w = jax.random.normal(kw, (fan_in, fan_out), jnp.float32) * 0.02
        b = jax.random.normal(kb, (1, fan_out), jnp.float32) * 0.02
        return w, b

    keys = jax.random.split(key, 4 + L)
    params = dict(
        word_emb=jax.random.normal(keys[0], (cfg["vocab"], H), jnp.float32) * 0.02,
        pos_emb=jax.random.normal(keys[1], (cfg["max_pos"], H), jnp.float32) * 0.02,
        type_emb=jax.random.normal(keys[2], (cfg["type_vocab"], H), jnp.float32) * 0.02,
        emb_ln_g=jnp.ones((1, H), jnp.float32),
        emb_ln_b=jnp.zeros((1, H), jnp.float32),
    )

    wqkv, bqkv, wo, bo, w1, b1, w2, b2 = ([] for _ in range(8))
    for li in range(L):
        lk = jax.random.split(keys[4 + li], 6)
        wq, bq_ = dense(lk[0], H, H)
        wk, bk_ = dense(lk[1], H, H)
        wv, bv_ = dense(lk[2], H, H)
        wo_l, bo_l = dense(lk[3], H, H)
        w1_l, b1_l = dense(lk[4], H, I)
        w2_l, b2_l = dense(lk[5], I, H)
        wqkv.append(jnp.concatenate([wq, wk, wv], axis=1))      # (H, 3H) fused QKV
        bqkv.append(jnp.concatenate([bq_, bk_, bv_], axis=1))   # (1, 3H)
        wo.append(wo_l); bo.append(bo_l)
        w1.append(w1_l); b1.append(b1_l)
        w2.append(w2_l); b2.append(b2_l)

    # stacked per-layer weights; matmul operands stored bf16 (halves weight DMA)
    params.update(
        wqkv=jnp.stack(wqkv).astype(jnp.bfloat16),
        bqkv=jnp.stack(bqkv),
        wo=jnp.stack(wo).astype(jnp.bfloat16),
        bo=jnp.stack(bo),
        ln1_g=jnp.ones((L, 1, H), jnp.float32),
        ln1_b=jnp.zeros((L, 1, H), jnp.float32),
        w1=jnp.stack(w1).astype(jnp.bfloat16),
        b1=jnp.stack(b1),
        w2=jnp.stack(w2).astype(jnp.bfloat16),
        b2=jnp.stack(b2),
        ln2_g=jnp.ones((L, 1, H), jnp.float32),
        ln2_b=jnp.zeros((L, 1, H), jnp.float32),
    )
    pw, pb = dense(keys[3], H, E)
    params["proj_w"] = pw.astype(jnp.bfloat16)
    params["proj_b"] = pb
    return params


def _embedding_sum(params, token_ids, cfg):
    B, S = token_ids.shape
    H = cfg["hidden"]
    return (params["word_emb"][token_ids]
            + params["pos_emb"][jnp.arange(S)][None, :, :]
            + params["type_emb"][0][None, None, :]).reshape(B * S, H).astype(jnp.float32)


def text_encoder_forward(params, token_ids, cfg):
    B, S = token_ids.shape
    H = cfg["hidden"]
    I = cfg["intermediate"]
    E = cfg["embedding_dim"]
    nH = cfg["heads"]
    dH = H // nH
    L = cfg["layers"]

    # --- embedding gathers stay in plain JAX glue; LN happens inside the kernel --------
    x0 = _embedding_sum(params, token_ids, cfg)

    kern = functools.partial(_encoder_kernel, B=B, S=S, nH=nH, dH=dH,
                             eps=1e-12, scale=1.0 / math.sqrt(dH))

    def fixed2(shape):
        # whole-array 2-D block, same block every layer (stays resident across the grid)
        return pl.BlockSpec(shape, lambda l: (0, 0))

    def perlayer(shape2d):
        # stacked (L, a, b) array, one (1, a, b) slice per grid step (auto-prefetched)
        return pl.BlockSpec((1,) + shape2d, lambda l: (l, 0, 0))

    return pl.pallas_call(
        kern,
        out_shape=jax.ShapeDtypeStruct((B, E), jnp.float32),
        grid_spec=pltpu.PrefetchScalarGridSpec(
            num_scalar_prefetch=0,
            grid=(L,),
            in_specs=[
                fixed2((B * S, H)),        # x0 (embedding sum)
                fixed2((1, H)),            # emb LN gamma
                fixed2((1, H)),            # emb LN beta
                perlayer((H, 3 * H)),      # fused QKV weight
                perlayer((1, 3 * H)),      # fused QKV bias
                perlayer((H, H)),          # attn out-proj weight
                perlayer((1, H)),          # attn out-proj bias
                perlayer((1, H)),          # LN1 gamma
                perlayer((1, H)),          # LN1 beta
                perlayer((H, I)),          # FFN w1
                perlayer((1, I)),          # FFN b1
                perlayer((I, H)),          # FFN w2
                perlayer((1, H)),          # FFN b2
                perlayer((1, H)),          # LN2 gamma
                perlayer((1, H)),          # LN2 beta
                fixed2((H, E)),            # CLS projection weight
                fixed2((1, E)),            # CLS projection bias
            ],
            out_specs=fixed2((B, E)),
            scratch_shapes=[pltpu.VMEM((B * S, H), jnp.float32)],
        ),
        compiler_params=pltpu.CompilerParams(
            dimension_semantics=("arbitrary",)),   # sequential layer dependence
    )(x0, params["emb_ln_g"], params["emb_ln_b"],
      params["wqkv"], params["bqkv"], params["wo"], params["bo"],
      params["ln1_g"], params["ln1_b"],
      params["w1"], params["b1"], params["w2"], params["b2"],
      params["ln2_g"], params["ln2_b"],
      params["proj_w"], params["proj_b"])


# ------------------------------------------------------------------- pure-JAX reference

def text_encoder_reference(params, token_ids, cfg):
    B, S = token_ids.shape
    H = cfg["hidden"]
    nH = cfg["heads"]
    dH = H // nH
    L = cfg["layers"]
    eps = 1e-12
    scale = 1.0 / math.sqrt(dH)

    def layernorm(h, g, b):
        mu = jnp.mean(h, axis=-1, keepdims=True)
        var = jnp.mean((h - mu) ** 2, axis=-1, keepdims=True)
        return (h - mu) * lax.rsqrt(var + eps) * g + b

    x = layernorm(_embedding_sum(params, token_ids, cfg),
                  params["emb_ln_g"], params["emb_ln_b"])        # (B*S, H)
    for li in range(L):
        qkv = x @ params["wqkv"][li].astype(jnp.float32) + params["bqkv"][li]
        qkv = qkv.reshape(B, S, 3, nH, dH)
        q, k, v = qkv[:, :, 0], qkv[:, :, 1], qkv[:, :, 2]        # (B,S,nH,dH)
        s = jnp.einsum("bqhd,bkhd->bhqk", q, k) * scale
        p = jax.nn.softmax(s, axis=-1)
        ctx = jnp.einsum("bhqk,bkhd->bqhd", p, v).reshape(B * S, H)
        attn = ctx @ params["wo"][li].astype(jnp.float32) + params["bo"][li]
        x1 = layernorm(x + attn, params["ln1_g"][li], params["ln1_b"][li])
        h = x1 @ params["w1"][li].astype(jnp.float32) + params["b1"][li]
        h = 0.5 * h * (1.0 + lax.erf(h / math.sqrt(2.0)))
        f = h @ params["w2"][li].astype(jnp.float32) + params["b2"][li]
        x = layernorm(x1 + f, params["ln2_g"][li], params["ln2_b"][li])
    cls = x.reshape(B, S, H)[:, 0, :]
    return cls @ params["proj_w"].astype(jnp.float32) + params["proj_b"]


# ----------------------------------------------------------------------------- main

if __name__ == "__main__":
    key = jax.random.PRNGKey(0)
    pkey, dkey = jax.random.split(key)

    params = init_params(pkey, CFG)

    B, S = 2, 8
    # synthetic "tokenized text" (token ids); position 0 plays the role of [CLS]
    text = jax.random.randint(dkey, (B, S), 0, CFG["vocab"], dtype=jnp.int32)

    features = text_encoder_forward(params, text, CFG)
    features = jax.block_until_ready(features)

    assert features.shape == (B, CFG["embedding_dim"])
    assert features.dtype == jnp.float32
    assert bool(jnp.all(jnp.isfinite(features)))

    ref = jax.block_until_ready(text_encoder_reference(params, text, CFG))
    assert bool(jnp.allclose(features, ref, atol=5e-2, rtol=5e-2)), (
        f"max abs err {float(jnp.max(jnp.abs(features - ref)))}")

    print("KERNEL_OK")
</pallas_src>

<mosaic_0001>
module attributes {stable_mosaic.version = 11 : i64} {
  func.func @_encoder_kernel(%arg0: i32, %arg1: memref<16x32xf32, #tpu.memory_space<vmem>>, %arg2: memref<1x32xf32, #tpu.memory_space<vmem>>, %arg3: memref<1x32xf32, #tpu.memory_space<vmem>>, %arg4: memref<1x32x96xbf16, #tpu.memory_space<vmem>>, %arg5: memref<1x1x96xf32, #tpu.memory_space<vmem>>, %arg6: memref<1x32x32xbf16, #tpu.memory_space<vmem>>, %arg7: memref<1x1x32xf32, #tpu.memory_space<vmem>>, %arg8: memref<1x1x32xf32, #tpu.memory_space<vmem>>, %arg9: memref<1x1x32xf32, #tpu.memory_space<vmem>>, %arg10: memref<1x32x64xbf16, #tpu.memory_space<vmem>>, %arg11: memref<1x1x64xf32, #tpu.memory_space<vmem>>, %arg12: memref<1x64x32xbf16, #tpu.memory_space<vmem>>, %arg13: memref<1x1x32xf32, #tpu.memory_space<vmem>>, %arg14: memref<1x1x32xf32, #tpu.memory_space<vmem>>, %arg15: memref<1x1x32xf32, #tpu.memory_space<vmem>>, %arg16: memref<32x24xbf16, #tpu.memory_space<vmem>>, %arg17: memref<1x24xf32, #tpu.memory_space<vmem>>, %arg18: memref<2x24xf32, #tpu.memory_space<vmem>>, %arg19: memref<16x32xf32, #tpu.memory_space<vmem>>) attributes {dimension_semantics = [#tpu.dimension_semantics<arbitrary>], iteration_bounds = array<i64: 2>, scalar_prefetch = 0 : i64, scratch_operands = 1 : i64, tpu.core_type = #tpu.core_type<tc>, window_params = [{pipeline_mode = #tpu.pipeline_mode<synchronous>, transform_indices = @transform_0, window_bounds = array<i64: 16, 32>}, {pipeline_mode = #tpu.pipeline_mode<synchronous>, transform_indices = @transform_1, window_bounds = array<i64: 1, 32>}, {pipeline_mode = #tpu.pipeline_mode<synchronous>, transform_indices = @transform_2, window_bounds = array<i64: 1, 32>}, {transform_indices = @transform_3, window_bounds = array<i64: 1, 32, 96>}, {transform_indices = @transform_4, window_bounds = array<i64: 1, 1, 96>}, {transform_indices = @transform_5, window_bounds = array<i64: 1, 32, 32>}, {transform_indices = @transform_6, window_bounds = array<i64: 1, 1, 32>}, {transform_indices = @transform_7, window_bounds = array<i64: 1, 1, 32>}, {transform_indices = @transform_8, window_bounds = array<i64: 1, 1, 32>}, {transform_indices = @transform_9, window_bounds = array<i64: 1, 32, 64>}, {transform_indices = @transform_10, window_bounds = array<i64: 1, 1, 64>}, {transform_indices = @transform_11, window_bounds = array<i64: 1, 64, 32>}, {transform_indices = @transform_12, window_bounds = array<i64: 1, 1, 32>}, {transform_indices = @transform_13, window_bounds = array<i64: 1, 1, 32>}, {transform_indices = @transform_14, window_bounds = array<i64: 1, 1, 32>}, {pipeline_mode = #tpu.pipeline_mode<synchronous>, transform_indices = @transform_15, window_bounds = array<i64: 32, 24>}, {pipeline_mode = #tpu.pipeline_mode<synchronous>, transform_indices = @transform_16, window_bounds = array<i64: 1, 24>}, {pipeline_mode = #tpu.pipeline_mode<synchronous>, transform_indices = @transform_17, window_bounds = array<i64: 2, 24>}]} {
    %c0_i32 = arith.constant 0 : i32
    %0 = arith.cmpi eq, %arg0, %c0_i32 : i32
    %1 = arith.extui %0 : i1 to i32
    %c0_i32_0 = arith.constant 0 : i32
    %2 = arith.cmpi ne, %1, %c0_i32_0 : i32
    scf.if %2 {
      %c0_77 = arith.constant 0 : index
      %c0_78 = arith.constant 0 : index
      %189 = vector.load %arg1[%c0_77, %c0_78] : memref<16x32xf32, #tpu.memory_space<vmem>>, vector<16x32xf32>
      %c0_79 = arith.constant 0 : index
      %c0_80 = arith.constant 0 : index
      %190 = vector.load %arg2[%c0_79, %c0_80] : memref<1x32xf32, #tpu.memory_space<vmem>>, vector<1x32xf32>
      %c0_81 = arith.constant 0 : index
      %c0_82 = arith.constant 0 : index
      %191 = vector.load %arg3[%c0_81, %c0_82] : memref<1x32xf32, #tpu.memory_space<vmem>>, vector<1x32xf32>
      %cst_83 = arith.constant dense<0.000000e+00> : vector<16xf32>
      %192 = vector.multi_reduction <add>, %189, %cst_83 [1] : vector<16x32xf32> to vector<16xf32>
      %193 = vector.shape_cast %192 : vector<16xf32> to vector<16x1xf32>
      %cst_84 = arith.constant 3.200000e+01 : f32
      %194 = vector.broadcast %cst_84 : f32 to vector<16x1xf32>
      %195 = arith.divf %193, %194 : vector<16x1xf32>
      %196 = vector.broadcast %195 : vector<16x1xf32> to vector<16x32xf32>
      %197 = arith.subf %189, %196 : vector<16x32xf32>
      %198 = arith.mulf %197, %197 : vector<16x32xf32>
      %cst_85 = arith.constant dense<0.000000e+00> : vector<16xf32>
      %199 = vector.multi_reduction <add>, %198, %cst_85 [1] : vector<16x32xf32> to vector<16xf32>
      %200 = vector.shape_cast %199 : vector<16xf32> to vector<16x1xf32>
      %cst_86 = arith.constant 3.200000e+01 : f32
      %201 = vector.broadcast %cst_86 : f32 to vector<16x1xf32>
      %202 = arith.divf %200, %201 : vector<16x1xf32>
      %203 = vector.broadcast %195 : vector<16x1xf32> to vector<16x32xf32>
      %204 = arith.subf %189, %203 : vector<16x32xf32>
      %cst_87 = arith.constant 9.99999996E-13 : f32
      %205 = vector.broadcast %cst_87 : f32 to vector<16x1xf32>
      %206 = arith.addf %202, %205 : vector<16x1xf32>
      %207 = math.rsqrt %206 : vector<16x1xf32>
      %208 = vector.broadcast %207 : vector<16x1xf32> to vector<16x32xf32>
      %209 = arith.mulf %204, %208 : vector<16x32xf32>
      %210 = vector.broadcast %190 : vector<1x32xf32> to vector<16x32xf32>
      %211 = arith.mulf %209, %210 : vector<16x32xf32>
      %212 = vector.broadcast %191 : vector<1x32xf32> to vector<16x32xf32>
      %213 = arith.addf %211, %212 : vector<16x32xf32>
      %c0_88 = arith.constant 0 : index
      %c0_89 = arith.constant 0 : index
      %214 = vector.load %arg19[%c0_88, %c0_89] : memref<16x32xf32, #tpu.memory_space<vmem>>, vector<16x32xf32>
      tpu.vector_store %arg19[%c0_88, %c0_89], %213 {strides = array<i32>} : memref<16x32xf32, #tpu.memory_space<vmem>>, vector<16x32xf32>,
      %cst_90 = arith.constant 0.000000e+00 : f32
      %215 = vector.broadcast %cst_90 : f32 to vector<2x24xf32>
      %c0_91 = arith.constant 0 : index
      %c0_92 = arith.constant 0 : index
      %216 = vector.load %arg18[%c0_91, %c0_92] : memref<2x24xf32, #tpu.memory_space<vmem>>, vector<2x24xf32>
      tpu.vector_store %arg18[%c0_91, %c0_92], %215 {strides = array<i32>} : memref<2x24xf32, #tpu.memory_space<vmem>>, vector<2x24xf32>,
    } else {
    }
    %c0 = arith.constant 0 : index
    %c0_1 = arith.constant 0 : index
    %3 = vector.load %arg19[%c0, %c0_1] : memref<16x32xf32, #tpu.memory_space<vmem>>, vector<16x32xf32>
    %4 = arith.truncf %3 : vector<16x32xf32> to vector<16x32xbf16>
    %c0_2 = arith.constant 0 : index
    %c0_3 = arith.constant 0 : index
    %c0_4 = arith.constant 0 : index
    %5 = vector.load %arg4[%c0_2, %c0_3, %c0_4] : memref<1x32x96xbf16, #tpu.memory_space<vmem>>, vector<1x32x96xbf16>
    %6 = vector.shape_cast %5 : vector<1x32x96xbf16> to vector<32x96xbf16>
    %cst = arith.constant dense<0.000000e+00> : vector<16x96xf32>
    %7 = tpu.matmul %4, %6, %cst {dimension_numbers = #tpu.dot_dimension_numbers<[1], [0], [0], [1], [0, 0, 1, 1], [], []>} : vector<16x32xbf16>, vector<32x96xbf16>, vector<16x96xf32> -> vector<16x96xf32>
    %c0_5 = arith.constant 0 : index
    %c0_6 = arith.constant 0 : index
    %c0_7 = arith.constant 0 : index
    %8 = vector.load %arg5[%c0_5, %c0_6, %c0_7] : memref<1x1x96xf32, #tpu.memory_space<vmem>>, vector<1x1x96xf32>
    %9 = vector.shape_cast %8 : vector<1x1x96xf32> to vector<1x96xf32>
    %10 = vector.broadcast %9 : vector<1x96xf32> to vector<16x96xf32>
    %11 = arith.addf %7, %10 : vector<16x96xf32>
    %12 = vector.extract_strided_slice %11 {offsets = [0, 0], sizes = [8, 16], strides = [1, 1]} : vector<16x96xf32> to vector<8x16xf32>
    %13 = vector.extract_strided_slice %11 {offsets = [0, 32], sizes = [8, 16], strides = [1, 1]} : vector<16x96xf32> to vector<8x16xf32>
    %14 = vector.extract_strided_slice %11 {offsets = [0, 64], sizes = [8, 16], strides = [1, 1]} : vector<16x96xf32> to vector<8x16xf32>
    %15 = arith.truncf %12 : vector<8x16xf32> to vector<8x16xbf16>
    %16 = arith.truncf %13 : vector<8x16xf32> to vector<8x16xbf16>
    %cst_8 = arith.constant dense<0.000000e+00> : vector<8x8xf32>
    %17 = tpu.matmul %15, %16, %cst_8 {dimension_numbers = #tpu.dot_dimension_numbers<[1], [1], [0], [0], [0, 0, 1, 0], [], []>} : vector<8x16xbf16>, vector<8x16xbf16>, vector<8x8xf32> -> vector<8x8xf32>
    %cst_9 = arith.constant 2.500000e-01 : f32
    %18 = vector.broadcast %cst_9 : f32 to vector<8x8xf32>
    %19 = arith.mulf %17, %18 : vector<8x8xf32>
    %cst_10 = arith.constant dense<0xFF800000> : vector<8xf32>
    %20 = vector.multi_reduction <maximumf>, %19, %cst_10 [1] : vector<8x8xf32> to vector<8xf32>
    %21 = vector.shape_cast %20 : vector<8xf32> to vector<8x1xf32>
    %22 = vector.broadcast %21 : vector<8x1xf32> to vector<8x8xf32>
    %23 = arith.subf %19, %22 : vector<8x8xf32>
    %24 = math.exp %23 : vector<8x8xf32>
    %cst_11 = arith.constant dense<0.000000e+00> : vector<8xf32>
    %25 = vector.multi_reduction <add>, %24, %cst_11 [1] : vector<8x8xf32> to vector<8xf32>
    %26 = vector.shape_cast %25 : vector<8xf32> to vector<8x1xf32>
    %27 = tpu.reciprocal %26 {approx = true} : vector<8x1xf32> -> vector<8x1xf32>
    %28 = vector.broadcast %27 : vector<8x1xf32> to vector<8x8xf32>
    %29 = arith.mulf %24, %28 : vector<8x8xf32>
    %30 = arith.truncf %29 : vector<8x8xf32> to vector<8x8xbf16>
    %31 = arith.truncf %14 : vector<8x16xf32> to vector<8x16xbf16>
    %cst_12 = arith.constant dense<0.000000e+00> : vector<8x16xf32>
    %32 = tpu.matmul %30, %31, %cst_12 {dimension_numbers = #tpu.dot_dimension_numbers<[1], [0], [0], [1], [0, 0, 1, 1], [], []>} : vector<8x8xbf16>, vector<8x16xbf16>, vector<8x16xf32> -> vector<8x16xf32>
    %33 = vector.extract_strided_slice %11 {offsets = [0, 16], sizes = [8, 16], strides = [1, 1]} : vector<16x96xf32> to vector<8x16xf32>
    %34 = vector.extract_strided_slice %11 {offsets = [0, 48], sizes = [8, 16], strides = [1, 1]} : vector<16x96xf32> to vector<8x16xf32>
    %35 = vector.extract_strided_slice %11 {offsets = [0, 80], sizes = [8, 16], strides = [1, 1]} : vector<16x96xf32> to vector<8x16xf32>
    %36 = arith.truncf %33 : vector<8x16xf32> to vector<8x16xbf16>
    %37 = arith.truncf %34 : vector<8x16xf32> to vector<8x16xbf16>
    %cst_13 = arith.constant dense<0.000000e+00> : vector<8x8xf32>
    %38 = tpu.matmul %36, %37, %cst_13 {dimension_numbers = #tpu.dot_dimension_numbers<[1], [1], [0], [0], [0, 0, 1, 0], [], []>} : vector<8x16xbf16>, vector<8x16xbf16>, vector<8x8xf32> -> vector<8x8xf32>
    %cst_14 = arith.constant 2.500000e-01 : f32
    %39 = vector.broadcast %cst_14 : f32 to vector<8x8xf32>
    %40 = arith.mulf %38, %39 : vector<8x8xf32>
    %cst_15 = arith.constant dense<0xFF800000> : vector<8xf32>
    %41 = vector.multi_reduction <maximumf>, %40, %cst_15 [1] : vector<8x8xf32> to vector<8xf32>
    %42 = vector.shape_cast %41 : vector<8xf32> to vector<8x1xf32>
    %43 = vector.broadcast %42 : vector<8x1xf32> to vector<8x8xf32>
    %44 = arith.subf %40, %43 : vector<8x8xf32>
    %45 = math.exp %44 : vector<8x8xf32>
    %cst_16 = arith.constant dense<0.000000e+00> : vector<8xf32>
    %46 = vector.multi_reduction <add>, %45, %cst_16 [1] : vector<8x8xf32> to vector<8xf32>
    %47 = vector.shape_cast %46 : vector<8xf32> to vector<8x1xf32>
    %48 = tpu.reciprocal %47 {approx = true} : vector<8x1xf32> -> vector<8x1xf32>
    %49 = vector.broadcast %48 : vector<8x1xf32> to vector<8x8xf32>
    %50 = arith.mulf %45, %49 : vector<8x8xf32>
    %51 = arith.truncf %50 : vector<8x8xf32> to vector<8x8xbf16>
    %52 = arith.truncf %35 : vector<8x16xf32> to vector<8x16xbf16>
    %cst_17 = arith.constant dense<0.000000e+00> : vector<8x16xf32>
    %53 = tpu.matmul %51, %52, %cst_17 {dimension_numbers = #tpu.dot_dimension_numbers<[1], [0], [0], [1], [0, 0, 1, 1], [], []>} : vector<8x8xbf16>, vector<8x16xbf16>, vector<8x16xf32> -> vector<8x16xf32>
    %54 = tpu.concatenate %32, %53 in 1 : vector<8x16xf32>, vector<8x16xf32> -> vector<8x32xf32>
    %55 = vector.extract_strided_slice %11 {offsets = [8, 0], sizes = [8, 16], strides = [1, 1]} : vector<16x96xf32> to vector<8x16xf32>
    %56 = vector.extract_strided_slice %11 {offsets = [8, 32], sizes = [8, 16], strides = [1, 1]} : vector<16x96xf32> to vector<8x16xf32>
    %57 = vector.extract_strided_slice %11 {offsets = [8, 64], sizes = [8, 16], strides = [1, 1]} : vector<16x96xf32> to vector<8x16xf32>
    %58 = arith.truncf %55 : vector<8x16xf32> to vector<8x16xbf16>
    %59 = arith.truncf %56 : vector<8x16xf32> to vector<8x16xbf16>
    %cst_18 = arith.constant dense<0.000000e+00> : vector<8x8xf32>
    %60 = tpu.matmul %58, %59, %cst_18 {dimension_numbers = #tpu.dot_dimension_numbers<[1], [1], [0], [0], [0, 0, 1, 0], [], []>} : vector<8x16xbf16>, vector<8x16xbf16>, vector<8x8xf32> -> vector<8x8xf32>
    %cst_19 = arith.constant 2.500000e-01 : f32
    %61 = vector.broadcast %cst_19 : f32 to vector<8x8xf32>
    %62 = arith.mulf %60, %61 : vector<8x8xf32>
    %cst_20 = arith.constant dense<0xFF800000> : vector<8xf32>
    %63 = vector.multi_reduction <maximumf>, %62, %cst_20 [1] : vector<8x8xf32> to vector<8xf32>
    %64 = vector.shape_cast %63 : vector<8xf32> to vector<8x1xf32>
    %65 = vector.broadcast %64 : vector<8x1xf32> to vector<8x8xf32>
    %66 = arith.subf %62, %65 : vector<8x8xf32>
    %67 = math.exp %66 : vector<8x8xf32>
    %cst_21 = arith.constant dense<0.000000e+00> : vector<8xf32>
    %68 = vector.multi_reduction <add>, %67, %cst_21 [1] : vector<8x8xf32> to vector<8xf32>
    %69 = vector.shape_cast %68 : vector<8xf32> to vector<8x1xf32>
    %70 = tpu.reciprocal %69 {approx = true} : vector<8x1xf32> -> vector<8x1xf32>
    %71 = vector.broadcast %70 : vector<8x1xf32> to vector<8x8xf32>
    %72 = arith.mulf %67, %71 : vector<8x8xf32>
    %73 = arith.truncf %72 : vector<8x8xf32> to vector<8x8xbf16>
    %74 = arith.truncf %57 : vector<8x16xf32> to vector<8x16xbf16>
    %cst_22 = arith.constant dense<0.000000e+00> : vector<8x16xf32>
    %75 = tpu.matmul %73, %74, %cst_22 {dimension_numbers = #tpu.dot_dimension_numbers<[1], [0], [0], [1], [0, 0, 1, 1], [], []>} : vector<8x8xbf16>, vector<8x16xbf16>, vector<8x16xf32> -> vector<8x16xf32>
    %76 = vector.extract_strided_slice %11 {offsets = [8, 16], sizes = [8, 16], strides = [1, 1]} : vector<16x96xf32> to vector<8x16xf32>
    %77 = vector.extract_strided_slice %11 {offsets = [8, 48], sizes = [8, 16], strides = [1, 1]} : vector<16x96xf32> to vector<8x16xf32>
    %78 = vector.extract_strided_slice %11 {offsets = [8, 80], sizes = [8, 16], strides = [1, 1]} : vector<16x96xf32> to vector<8x16xf32>
    %79 = arith.truncf %76 : vector<8x16xf32> to vector<8x16xbf16>
    %80 = arith.truncf %77 : vector<8x16xf32> to vector<8x16xbf16>
    %cst_23 = arith.constant dense<0.000000e+00> : vector<8x8xf32>
    %81 = tpu.matmul %79, %80, %cst_23 {dimension_numbers = #tpu.dot_dimension_numbers<[1], [1], [0], [0], [0, 0, 1, 0], [], []>} : vector<8x16xbf16>, vector<8x16xbf16>, vector<8x8xf32> -> vector<8x8xf32>
    %cst_24 = arith.constant 2.500000e-01 : f32
    %82 = vector.broadcast %cst_24 : f32 to vector<8x8xf32>
    %83 = arith.mulf %81, %82 : vector<8x8xf32>
    %cst_25 = arith.constant dense<0xFF800000> : vector<8xf32>
    %84 = vector.multi_reduction <maximumf>, %83, %cst_25 [1] : vector<8x8xf32> to vector<8xf32>
    %85 = vector.shape_cast %84 : vector<8xf32> to vector<8x1xf32>
    %86 = vector.broadcast %85 : vector<8x1xf32> to vector<8x8xf32>
    %87 = arith.subf %83, %86 : vector<8x8xf32>
    %88 = math.exp %87 : vector<8x8xf32>
    %cst_26 = arith.constant dense<0.000000e+00> : vector<8xf32>
    %89 = vector.multi_reduction <add>, %88, %cst_26 [1] : vector<8x8xf32> to vector<8xf32>
    %90 = vector.shape_cast %89 : vector<8xf32> to vector<8x1xf32>
    %91 = tpu.reciprocal %90 {approx = true} : vector<8x1xf32> -> vector<8x1xf32>
    %92 = vector.broadcast %91 : vector<8x1xf32> to vector<8x8xf32>
    %93 = arith.mulf %88, %92 : vector<8x8xf32>
    %94 = arith.truncf %93 : vector<8x8xf32> to vector<8x8xbf16>
    %95 = arith.truncf %78 : vector<8x16xf32> to vector<8x16xbf16>
    %cst_27 = arith.constant dense<0.000000e+00> : vector<8x16xf32>
    %96 = tpu.matmul %94, %95, %cst_27 {dimension_numbers = #tpu.dot_dimension_numbers<[1], [0], [0], [1], [0, 0, 1, 1], [], []>} : vector<8x8xbf16>, vector<8x16xbf16>, vector<8x16xf32> -> vector<8x16xf32>
    %97 = tpu.concatenate %75, %96 in 1 : vector<8x16xf32>, vector<8x16xf32> -> vector<8x32xf32>
    %98 = tpu.concatenate %54, %97 in 0 : vector<8x32xf32>, vector<8x32xf32> -> vector<16x32xf32>
    %99 = arith.truncf %98 : vector<16x32xf32> to vector<16x32xbf16>
    %c0_28 = arith.constant 0 : index
    %c0_29 = arith.constant 0 : index
    %c0_30 = arith.constant 0 : index
    %100 = vector.load %arg6[%c0_28, %c0_29, %c0_30] : memref<1x32x32xbf16, #tpu.memory_space<vmem>>, vector<1x32x32xbf16>
    %101 = vector.shape_cast %100 : vector<1x32x32xbf16> to vector<32x32xbf16>
    %cst_31 = arith.constant dense<0.000000e+00> : vector<16x32xf32>
    %102 = tpu.matmul %99, %101, %cst_31 {dimension_numbers = #tpu.dot_dimension_numbers<[1], [0], [0], [1], [0, 0, 1, 1], [], []>} : vector<16x32xbf16>, vector<32x32xbf16>, vector<16x32xf32> -> vector<16x32xf32>
    %c0_32 = arith.constant 0 : index
    %c0_33 = arith.constant 0 : index
    %c0_34 = arith.constant 0 : index
    %103 = vector.load %arg7[%c0_32, %c0_33, %c0_34] : memref<1x1x32xf32, #tpu.memory_space<vmem>>, vector<1x1x32xf32>
    %104 = vector.shape_cast %103 : vector<1x1x32xf32> to vector<1x32xf32>
    %105 = vector.broadcast %104 : vector<1x32xf32> to vector<16x32xf32>
    %106 = arith.addf %102, %105 : vector<16x32xf32>
    %107 = arith.addf %3, %106 : vector<16x32xf32>
    %c0_35 = arith.constant 0 : index
    %c0_36 = arith.constant 0 : index
    %c0_37 = arith.constant 0 : index
    %108 = vector.load %arg8[%c0_35, %c0_36, %c0_37] : memref<1x1x32xf32, #tpu.memory_space<vmem>>, vector<1x1x32xf32>
    %109 = vector.shape_cast %108 : vector<1x1x32xf32> to vector<1x32xf32>
    %c0_38 = arith.constant 0 : index
    %c0_39 = arith.constant 0 : index
    %c0_40 = arith.constant 0 : index
    %110 = vector.load %arg9[%c0_38, %c0_39, %c0_40] : memref<1x1x32xf32, #tpu.memory_space<vmem>>, vector<1x1x32xf32>
    %111 = vector.shape_cast %110 : vector<1x1x32xf32> to vector<1x32xf32>
    %cst_41 = arith.constant dense<0.000000e+00> : vector<16xf32>
    %112 = vector.multi_reduction <add>, %107, %cst_41 [1] : vector<16x32xf32> to vector<16xf32>
    %113 = vector.shape_cast %112 : vector<16xf32> to vector<16x1xf32>
    %cst_42 = arith.constant 3.200000e+01 : f32
    %114 = vector.broadcast %cst_42 : f32 to vector<16x1xf32>
    %115 = arith.divf %113, %114 : vector<16x1xf32>
    %116 = vector.broadcast %115 : vector<16x1xf32> to vector<16x32xf32>
    %117 = arith.subf %107, %116 : vector<16x32xf32>
    %118 = arith.mulf %117, %117 : vector<16x32xf32>
    %cst_43 = arith.constant dense<0.000000e+00> : vector<16xf32>
    %119 = vector.multi_reduction <add>, %118, %cst_43 [1] : vector<16x32xf32> to vector<16xf32>
    %120 = vector.shape_cast %119 : vector<16xf32> to vector<16x1xf32>
    %cst_44 = arith.constant 3.200000e+01 : f32
    %121 = vector.broadcast %cst_44 : f32 to vector<16x1xf32>
    %122 = arith.divf %120, %121 : vector<16x1xf32>
    %123 = vector.broadcast %115 : vector<16x1xf32> to vector<16x32xf32>
    %124 = arith.subf %107, %123 : vector<16x32xf32>
    %cst_45 = arith.constant 9.99999996E-13 : f32
    %125 = vector.broadcast %cst_45 : f32 to vector<16x1xf32>
    %126 = arith.addf %122, %125 : vector<16x1xf32>
    %127 = math.rsqrt %126 : vector<16x1xf32>
    %128 = vector.broadcast %127 : vector<16x1xf32> to vector<16x32xf32>
    %129 = arith.mulf %124, %128 : vector<16x32xf32>
    %130 = vector.broadcast %109 : vector<1x32xf32> to vector<16x32xf32>
    %131 = arith.mulf %129, %130 : vector<16x32xf32>
    %132 = vector.broadcast %111 : vector<1x32xf32> to vector<16x32xf32>
    %133 = arith.addf %131, %132 : vector<16x32xf32>
    %134 = arith.truncf %133 : vector<16x32xf32> to vector<16x32xbf16>
    %c0_46 = arith.constant 0 : index
    %c0_47 = arith.constant 0 : index
    %c0_48 = arith.constant 0 : index
    %135 = vector.load %arg10[%c0_46, %c0_47, %c0_48] : memref<1x32x64xbf16, #tpu.memory_space<vmem>>, vector<1x32x64xbf16>
    %136 = vector.shape_cast %135 : vector<1x32x64xbf16> to vector<32x64xbf16>
    %cst_49 = arith.constant dense<0.000000e+00> : vector<16x64xf32>
    %137 = tpu.matmul %134, %136, %cst_49 {dimension_numbers = #tpu.dot_dimension_numbers<[1], [0], [0], [1], [0, 0, 1, 1], [], []>} : vector<16x32xbf16>, vector<32x64xbf16>, vector<16x64xf32> -> vector<16x64xf32>
    %c0_50 = arith.constant 0 : index
    %c0_51 = arith.constant 0 : index
    %c0_52 = arith.constant 0 : index
    %138 = vector.load %arg11[%c0_50, %c0_51, %c0_52] : memref<1x1x64xf32, #tpu.memory_space<vmem>>, vector<1x1x64xf32>
    %139 = vector.shape_cast %138 : vector<1x1x64xf32> to vector<1x64xf32>
    %140 = vector.broadcast %139 : vector<1x64xf32> to vector<16x64xf32>
    %141 = arith.addf %137, %140 : vector<16x64xf32>
    %cst_53 = arith.constant 5.000000e-01 : f32
    %142 = vector.broadcast %cst_53 : f32 to vector<16x64xf32>
    %143 = arith.mulf %142, %141 : vector<16x64xf32>
    %cst_54 = arith.constant 0.707106769 : f32
    %144 = vector.broadcast %cst_54 : f32 to vector<16x64xf32>
    %145 = arith.mulf %141, %144 : vector<16x64xf32>
    %146 = math.erf %145 : vector<16x64xf32>
    %cst_55 = arith.constant 1.000000e+00 : f32
    %147 = vector.broadcast %cst_55 : f32 to vector<16x64xf32>
    %148 = arith.addf %147, %146 : vector<16x64xf32>
    %149 = arith.mulf %143, %148 : vector<16x64xf32>
    %150 = arith.truncf %149 : vector<16x64xf32> to vector<16x64xbf16>
    %c0_56 = arith.constant 0 : index
    %c0_57 = arith.constant 0 : index
    %c0_58 = arith.constant 0 : index
    %151 = vector.load %arg12[%c0_56, %c0_57, %c0_58] : memref<1x64x32xbf16, #tpu.memory_space<vmem>>, vector<1x64x32xbf16>
    %152 = vector.shape_cast %151 : vector<1x64x32xbf16> to vector<64x32xbf16>
    %cst_59 = arith.constant dense<0.000000e+00> : vector<16x32xf32>
    %153 = tpu.matmul %150, %152, %cst_59 {dimension_numbers = #tpu.dot_dimension_numbers<[1], [0], [0], [1], [0, 0, 1, 1], [], []>} : vector<16x64xbf16>, vector<64x32xbf16>, vector<16x32xf32> -> vector<16x32xf32>
    %c0_60 = arith.constant 0 : index
    %c0_61 = arith.constant 0 : index
    %c0_62 = arith.constant 0 : index
    %154 = vector.load %arg13[%c0_60, %c0_61, %c0_62] : memref<1x1x32xf32, #tpu.memory_space<vmem>>, vector<1x1x32xf32>
    %155 = vector.shape_cast %154 : vector<1x1x32xf32> to vector<1x32xf32>
    %156 = vector.broadcast %155 : vector<1x32xf32> to vector<16x32xf32>
    %157 = arith.addf %153, %156 : vector<16x32xf32>
    %158 = arith.addf %133, %157 : vector<16x32xf32>
    %c0_63 = arith.constant 0 : index
    %c0_64 = arith.constant 0 : index
    %c0_65 = arith.constant 0 : index
    %159 = vector.load %arg14[%c0_63, %c0_64, %c0_65] : memref<1x1x32xf32, #tpu.memory_space<vmem>>, vector<1x1x32xf32>
    %160 = vector.shape_cast %159 : vector<1x1x32xf32> to vector<1x32xf32>
    %c0_66 = arith.constant 0 : index
    %c0_67 = arith.constant 0 : index
    %c0_68 = arith.constant 0 : index
    %161 = vector.load %arg15[%c0_66, %c0_67, %c0_68] : memref<1x1x32xf32, #tpu.memory_space<vmem>>, vector<1x1x32xf32>
    %162 = vector.shape_cast %161 : vector<1x1x32xf32> to vector<1x32xf32>
    %cst_69 = arith.constant dense<0.000000e+00> : vector<16xf32>
    %163 = vector.multi_reduction <add>, %158, %cst_69 [1] : vector<16x32xf32> to vector<16xf32>
    %164 = vector.shape_cast %163 : vector<16xf32> to vector<16x1xf32>
    %cst_70 = arith.constant 3.200000e+01 : f32
    %165 = vector.broadcast %cst_70 : f32 to vector<16x1xf32>
    %166 = arith.divf %164, %165 : vector<16x1xf32>
    %167 = vector.broadcast %166 : vector<16x1xf32> to vector<16x32xf32>
    %168 = arith.subf %158, %167 : vector<16x32xf32>
    %169 = arith.mulf %168, %168 : vector<16x32xf32>
    %cst_71 = arith.constant dense<0.000000e+00> : vector<16xf32>
    %170 = vector.multi_reduction <add>, %169, %cst_71 [1] : vector<16x32xf32> to vector<16xf32>
    %171 = vector.shape_cast %170 : vector<16xf32> to vector<16x1xf32>
    %cst_72 = arith.constant 3.200000e+01 : f32
    %172 = vector.broadcast %cst_72 : f32 to vector<16x1xf32>
    %173 = arith.divf %171, %172 : vector<16x1xf32>
    %174 = vector.broadcast %166 : vector<16x1xf32> to vector<16x32xf32>
    %175 = arith.subf %158, %174 : vector<16x32xf32>
    %cst_73 = arith.constant 9.99999996E-13 : f32
    %176 = vector.broadcast %cst_73 : f32 to vector<16x1xf32>
    %177 = arith.addf %173, %176 : vector<16x1xf32>
    %178 = math.rsqrt %177 : vector<16x1xf32>
    %179 = vector.broadcast %178 : vector<16x1xf32> to vector<16x32xf32>
    %180 = arith.mulf %175, %179 : vector<16x32xf32>
    %181 = vector.broadcast %160 : vector<1x32xf32> to vector<16x32xf32>
    %182 = arith.mulf %180, %181 : vector<16x32xf32>
    %183 = vector.broadcast %162 : vector<1x32xf32> to vector<16x32xf32>
    %184 = arith.addf %182, %183 : vector<16x32xf32>
    %c0_74 = arith.constant 0 : index
    %c0_75 = arith.constant 0 : index
    %185 = vector.load %arg19[%c0_74, %c0_75] : memref<16x32xf32, #tpu.memory_space<vmem>>, vector<16x32xf32>
    tpu.vector_store %arg19[%c0_74, %c0_75], %184 {strides = array<i32>} : memref<16x32xf32, #tpu.memory_space<vmem>>, vector<16x32xf32>,
    %c1_i32 = arith.constant 1 : i32
    %186 = arith.cmpi eq, %arg0, %c1_i32 : i32
    %187 = arith.extui %186 : i1 to i32
    %c0_i32_76 = arith.constant 0 : i32
    %188 = arith.cmpi ne, %187, %c0_i32_76 : i32
    scf.if %188 {
      %189 = vector.extract_strided_slice %184 {offsets = [0, 0], sizes = [1, 32], strides = [1, 1]} : vector<16x32xf32> to vector<1x32xf32>
      %190 = vector.extract_strided_slice %184 {offsets = [8, 0], sizes = [1, 32], strides = [1, 1]} : vector<16x32xf32> to vector<1x32xf32>
      %191 = tpu.concatenate %189, %190 in 0 : vector<1x32xf32>, vector<1x32xf32> -> vector<2x32xf32>
      %192 = arith.truncf %191 : vector<2x32xf32> to vector<2x32xbf16>
      %c0_77 = arith.constant 0 : index
      %c0_78 = arith.constant 0 : index
      %193 = vector.load %arg16[%c0_77, %c0_78] : memref<32x24xbf16, #tpu.memory_space<vmem>>, vector<32x24xbf16>
      %cst_79 = arith.constant dense<0.000000e+00> : vector<2x24xf32>
      %194 = tpu.matmul %192, %193, %cst_79 {dimension_numbers = #tpu.dot_dimension_numbers<[1], [0], [0], [1], [0, 0, 1, 1], [], []>} : vector<2x32xbf16>, vector<32x24xbf16>, vector<2x24xf32> -> vector<2x24xf32>
      %c0_80 = arith.constant 0 : index
      %c0_81 = arith.constant 0 : index
      %195 = vector.load %arg17[%c0_80, %c0_81] : memref<1x24xf32, #tpu.memory_space<vmem>>, vector<1x24xf32>
      %196 = vector.broadcast %195 : vector<1x24xf32> to vector<2x24xf32>
      %197 = arith.addf %194, %196 : vector<2x24xf32>
      %c0_82 = arith.constant 0 : index
      %c0_83 = arith.constant 0 : index
      %198 = vector.load %arg18[%c0_82, %c0_83] : memref<2x24xf32, #tpu.memory_space<vmem>>, vector<2x24xf32>
      tpu.vector_store %arg18[%c0_82, %c0_83], %197 {strides = array<i32>} : memref<2x24xf32, #tpu.memory_space<vmem>>, vector<2x24xf32>,
    } else {
    }
    return
  }
  func.func @transform_0(%arg0: i32) -> (i32, i32) {
    %c0_i32 = arith.constant 0 : i32
    %c0_i32_0 = arith.constant 0 : i32
    %c0_i32_1 = arith.constant 0 : i32
    return %c0_i32, %c0_i32_0 : i32, i32
  }
  func.func @transform_1(%arg0: i32) -> (i32, i32) {
    %c0_i32 = arith.constant 0 : i32
    %c0_i32_0 = arith.constant 0 : i32
    %c0_i32_1 = arith.constant 0 : i32
    return %c0_i32, %c0_i32_0 : i32, i32
  }
  func.func @transform_2(%arg0: i32) -> (i32, i32) {
    %c0_i32 = arith.constant 0 : i32
    %c0_i32_0 = arith.constant 0 : i32
    %c0_i32_1 = arith.constant 0 : i32
    return %c0_i32, %c0_i32_0 : i32, i32
  }
  func.func @transform_3(%arg0: i32) -> (i32, i32, i32) {
    %c0_i32 = arith.constant 0 : i32
    %c0_i32_0 = arith.constant 0 : i32
    %c0_i32_1 = arith.constant 0 : i32
    return %arg0, %c0_i32, %c0_i32_0 : i32, i32, i32
  }
  func.func @transform_4(%arg0: i32) -> (i32, i32, i32) {
    %c0_i32 = arith.constant 0 : i32
    %c0_i32_0 = arith.constant 0 : i32
    %c0_i32_1 = arith.constant 0 : i32
    return %arg0, %c0_i32, %c0_i32_0 : i32, i32, i32
  }
  func.func @transform_5(%arg0: i32) -> (i32, i32, i32) {
    %c0_i32 = arith.constant 0 : i32
    %c0_i32_0 = arith.constant 0 : i32
    %c0_i32_1 = arith.constant 0 : i32
    return %arg0, %c0_i32, %c0_i32_0 : i32, i32, i32
  }
  func.func @transform_6(%arg0: i32) -> (i32, i32, i32) {
    %c0_i32 = arith.constant 0 : i32
    %c0_i32_0 = arith.constant 0 : i32
    %c0_i32_1 = arith.constant 0 : i32
    return %arg0, %c0_i32, %c0_i32_0 : i32, i32, i32
  }
  func.func @transform_7(%arg0: i32) -> (i32, i32, i32) {
    %c0_i32 = arith.constant 0 : i32
    %c0_i32_0 = arith.constant 0 : i32
    %c0_i32_1 = arith.constant 0 : i32
    return %arg0, %c0_i32, %c0_i32_0 : i32, i32, i32
  }
  func.func @transform_8(%arg0: i32) -> (i32, i32, i32) {
    %c0_i32 = arith.constant 0 : i32
    %c0_i32_0 = arith.constant 0 : i32
    %c0_i32_1 = arith.constant 0 : i32
    return %arg0, %c0_i32, %c0_i32_0 : i32, i32, i32
  }
  func.func @transform_9(%arg0: i32) -> (i32, i32, i32) {
    %c0_i32 = arith.constant 0 : i32
    %c0_i32_0 = arith.constant 0 : i32
    %c0_i32_1 = arith.constant 0 : i32
    return %arg0, %c0_i32, %c0_i32_0 : i32, i32, i32
  }
  func.func @transform_10(%arg0: i32) -> (i32, i32, i32) {
    %c0_i32 = arith.constant 0 : i32
    %c0_i32_0 = arith.constant 0 : i32
    %c0_i32_1 = arith.constant 0 : i32
    return %arg0, %c0_i32, %c0_i32_0 : i32, i32, i32
  }
  func.func @transform_11(%arg0: i32) -> (i32, i32, i32) {
    %c0_i32 = arith.constant 0 : i32
    %c0_i32_0 = arith.constant 0 : i32
    %c0_i32_1 = arith.constant 0 : i32
    return %arg0, %c0_i32, %c0_i32_0 : i32, i32, i32
  }
  func.func @transform_12(%arg0: i32) -> (i32, i32, i32) {
    %c0_i32 = arith.constant 0 : i32
    %c0_i32_0 = arith.constant 0 : i32
    %c0_i32_1 = arith.constant 0 : i32
    return %arg0, %c0_i32, %c0_i32_0 : i32, i32, i32
  }
  func.func @transform_13(%arg0: i32) -> (i32, i32, i32) {
    %c0_i32 = arith.constant 0 : i32
    %c0_i32_0 = arith.constant 0 : i32
    %c0_i32_1 = arith.constant 0 : i32
    return %arg0, %c0_i32, %c0_i32_0 : i32, i32, i32
  }
  func.func @transform_14(%arg0: i32) -> (i32, i32, i32) {
    %c0_i32 = arith.constant 0 : i32
    %c0_i32_0 = arith.constant 0 : i32
    %c0_i32_1 = arith.constant 0 : i32
    return %arg0, %c0_i32, %c0_i32_0 : i32, i32, i32
  }
  func.func @transform_15(%arg0: i32) -> (i32, i32) {
    %c0_i32 = arith.constant 0 : i32
    %c0_i32_0 = arith.constant 0 : i32
    %c0_i32_1 = arith.constant 0 : i32
    return %c0_i32, %c0_i32_0 : i32, i32
  }
  func.func @transform_16(%arg0: i32) -> (i32, i32) {
    %c0_i32 = arith.constant 0 : i32
    %c0_i32_0 = arith.constant 0 : i32
    %c0_i32_1 = arith.constant 0 : i32
    return %c0_i32, %c0_i32_0 : i32, i32
  }
  func.func @transform_17(%arg0: i32) -> (i32, i32) {
    %c0_i32 = arith.constant 0 : i32
    %c0_i32_0 = arith.constant 0 : i32
    %c0_i32_1 = arith.constant 0 : i32
    return %c0_i32, %c0_i32_0 : i32, i32
  }
}

</mosaic_0001>

<bundles_post_ra>
// kernel: tpu_custom_call.1
= control target key start
LH: loop header
LB: loop body
LE: loop exit
PB: predicated region body
PF: predicated region fallthrough
CT: control target
= control target key end

     0   :  { %s2843_s0 = inlined_call_operand.vmem [shape: f32[16,32], index: 0, kind: input, shape index: {}]   ;;  %s2844_s1 = inlined_call_operand.vmem [shape: f32[1,32], index: 1, kind: input, shape index: {}]   ;;  %s2845_s2 = inlined_call_operand.hbm [shape: f32[1,32], index: 2, kind: input, shape index: {}]   ;;  %s2846_s3 = inlined_call_operand.vmem [shape: bf16[2,32,96], index: 3, kind: input, shape index: {}]   ;;  %s2847_s4 = inlined_call_operand.vmem [shape: f32[2,1,96], index: 4, kind: input, shape index: {}]   ;;  %s2848_s5 = inlined_call_operand.vmem [shape: bf16[2,32,32], index: 5, kind: input, shape index: {}]   ;;  %s2849_s6 = inlined_call_operand.vmem [shape: f32[2,1,32], index: 6, kind: input, shape index: {}]   ;;  %s2850_s7 = inlined_call_operand.vmem [shape: f32[2,1,32], index: 7, kind: input, shape index: {}]   ;;  %s2851_s8 = inlined_call_operand.vmem [shape: f32[2,1,32], index: 8, kind: input, shape index: {}]   ;;  %s2852_s9 = inlined_call_operand.vmem [shape: bf16[2,32,64], index: 9, kind: input, shape index: {}]   ;;  %s2853_s10 = inlined_call_operand.hbm [shape: f32[2,1,64], index: 10, kind: input, shape index: {}]   ;;  %s2854_s11 = inlined_call_operand.vmem [shape: bf16[2,64,32], index: 11, kind: input, shape index: {}]   ;;  %s2855_s12 = inlined_call_operand.vmem [shape: f32[2,1,32], index: 12, kind: input, shape index: {}]   ;;  %s2856_s13 = inlined_call_operand.vmem [shape: f32[2,1,32], index: 13, kind: input, shape index: {}]   ;;  %s2857_s14 = inlined_call_operand.vmem [shape: f32[2,1,32], index: 14, kind: input, shape index: {}]   ;;  %s2858_s15 = inlined_call_operand.vmem [shape: bf16[32,24], index: 15, kind: input, shape index: {}]   ;;  %s2859_s16 = inlined_call_operand.vmem [shape: f32[1,24], index: 16, kind: input, shape index: {}]   ;;  %s2860_s17 = inlined_call_operand.hbm [shape: f32[2,24], index: 17, kind: output, shape index: {}]  }
   0x1   :  { %2871 = sst [smem:[#allocation16_spill]] %s2843_s0 }
   0x2   :  { %2872 = sst [smem:[#allocation17_spill]] %s2844_s1 }
   0x3   :  { %2873 = sst [smem:[#allocation18_spill]] %s2845_s2 }
   0x4   :  { %2874 = sst [smem:[#allocation19_spill]] %s2846_s3 }
   0x5   :  { %2875 = sst [smem:[#allocation20_spill]] %s2848_s5 }
   0x6   :  { %2876 = sst [smem:[#allocation21_spill]] %s2853_s10 }
   0x7   :  { %2877 = sst [smem:[#allocation22_spill]] %s2858_s15 }
   0x8   :  { %2878 = sst [smem:[#allocation23_spill]] %s2859_s16 }
   0x9   :  { %2879 = sst [smem:[#allocation24_spill]] %s2860_s17 }
   0xa   :  { %22 = vsyncpa [#allocation4], 0 }
   0xb   :  { %23 = vsyncpa [#allocation7], 0 }
   0xc   :  { %25 = vsyncpa [#allocation7 + $0x1], 0 }
   0xd   :  { %26 = vsyncpa [#allocation5], 0  ;;  %s2441_s24 = smov 0   ;;  %s2443_s25 = smov 0  }
   0xe   :  { %s2445_s26 = smov 0   ;;  %s2447_s27 = smov 0  }
   0xf LB: > { %2880 = sst [smem:[#allocation12_spill]] %s2327_s25  ;;  %s2460_s28 = sadd.s32 4294967295, %s2335_s27   ;;  %s2335_s27 = sphi %s2447_s27, %s2908_s27   ;;  %s2331_s26 = sphi %s2445_s26, %s2911_s26   ;;  %s2327_s25 = sphi %s2443_s25, %s2910_s25   ;;  %s2323_s24 = sphi %s2441_s24, %s2909_s24  }
  0x10   : > { %2881 = sst [smem:[#allocation13_spill]] %s2331_s26  ;;  %p297_p0 = scmp.ne.s32.totalorder %s2327_s25, %s2323_s24 }
  0x11   : > { %p2866_p1 = scmp.eq.s32.totalorder %s2460_s28, 0  ;;  %p1907_p2 = scmp.ge.s32.totalorder %s2335_s27, 1 }
  0x12   : > { %p475_p3 = scmp.lt.s32.totalorder %s2335_s27, 3  ;;  %s2337_s30 = smov [#allocation3]  }
  0x13   : > { %p2469_p5 = por %p2866_p1, %p297_p0  ;;  %s494_s18 = sshll.u32 %s2337_s30, 4  ;;  %s495_s18 = int_to_ptr.vmem [resolvable:$true] %s494_s18 }
  0x14   : > { %p2473_p6 = pnand %p1907_p2, %p475_p3  ;;  %s2480_s19 = sadd.s32 1, %s2335_s27  }
  0x15   : > { %s2882_s29 = scalar_select %p2469_p5, 1, 0 }
  0x16   : > { %s2883_s0 = scalar_select %p2473_p6, 1, 0 }
  0x17   : > { %p2102_p7 = pneg %p2473_p6  ;;  %2884 = sst [smem:[#allocation14_spill]] %s2480_s19 }
  0x18   : > { %s281_s20 = ssub.s32 %s2335_s27, %s2480_s19  ;;  %s284_s22 = sadd.s32 1, %s2331_s26 }
  0x19   : > { %p2484_p8 = pnand %p2102_p7, %p2866_p1  ;;  %p2490_p9 = scmp.eq.s32.totalorder %s281_s20, 0 }
  0x1a   : > { %s2887_s2 = sld [smem:[#allocation18_spill]] }
  0x1b   : > { %s2886_s21 = scalar_select %p2490_p9, 1, 0 }
  0x1c   : > { %p2211_p12 = pneg %p2484_p8 }
  0x20   : > { %s2209_s30 = scalar_lea.hbm %s2887_s2, 16 }
  0x21   : > { %p2210_p11 = scmp.ne.s32.totalorder %s2887_s2, %s2209_s30  ;;  %p2216_p2 = scmp.lt.u32.totalorder %s2209_s30, %s2887_s2 }
  0x23   : > { %p2212_p13 = pnand %p2211_p12, %p2210_p11 }
  0x25   : > { %p2213_p0 = pneg %p2212_p13 }
  0x27   : > { %p2218_p3 = pnand %p2216_p2, %p2213_p0 }
  0x29   : > { %2221 = shalt.err (!%p2218_p3)
}
  0x2a   : > { %s2222_s20 = scalar_lea.vmem %s495_s18, 16  ;;  %s2229_s23 = scalar_lea.vmem %s495_s18, 32 }
  0x2b   : > { %p2223_p7 = scmp.ne.s32.totalorder %s495_s18, %s2222_s20  ;;  %p2230_p10 = scmp.lt.s32.totalorder %s495_s18, %s495_s18 }
  0x2c   : > { %p2231_p5 = scmp.lt.s32.totalorder %s2229_s23, %s2222_s20 }
  0x2d   : > { %p2225_p4 = pnand %p2223_p7, %p2211_p12 }
  0x2e   : > { %p2232_p6 = por %p2231_p5, %p2230_p10 }
  0x2f   : > { %p2226_p1 = pneg %p2225_p4 }
  0x31   : > { %p2233_p9 = pnand %p2232_p6, %p2226_p1 }
  0x33   : > { %2236 = shalt.err (!%p2233_p9)
}
  0x34   : > { %2105 = dma.hbm_to_vmem [thread:$0]  (!%p2484_p8), %s2887_s2, 16, %s495_s18, [#allocation4]  }
  0x35   : > { %p2888_p4 = scmp.ne.s32.totalorder %s2886_s21, 0  ;;  %p292_p5 = scmp.eq.s32.totalorder %s2335_s27, 0 }
  0x36   : > { %p2111_p1 = scmp.lt.s32.totalorder %s2335_s27, 2  ;;  %s559_s19 = sand.u32 1, %s2331_s26  }
  0x37   : > { %s2516_s15 = scalar_select %p2888_p4, %s2331_s26, %s284_s22  }
  0x38   : > { %s1910_s24 = sshll.u32 %s2335_s27, 4  ;;  %p2890_p6 = scmp.ne.s32.totalorder %s2331_s26, %s2327_s25 }
  0x39   : > { %2889 = sst [smem:[#allocation15_spill]] %s2516_s15  ;;  %s2891_s10 = sld [smem:[#allocation21_spill]] }
  0x3a   : > { %p293_p9 = por %p292_p5, %p2890_p6  ;;  %s562_s23 = scalar_lea.vmem [#allocation6], %s559_s19 }
  0x3b   : > { %s569_s18 = sshll.u32 %s562_s23, 4  ;;  %s560_s27 = scalar_lea.sflag [#allocation7], %s559_s19  ;;  %s2534_s18 = int_to_ptr.vmem [resolvable:$true] %s569_s18 }
  0x3c   : > { %p2530_p8 = pnand %p2111_p1, %p293_p9 }
  0x3e   : > { %p2239_p11 = pneg %p2530_p8 }
  0x3f   : > { %s2528_s20 = scalar_lea.hbm %s2891_s10, %s1910_s24  ;;  %s2242_s24 = scalar_lea.hbm %s2891_s10, 32 }
  0x40   : > { %s2237_s22 = scalar_lea.hbm %s2528_s20, 16  ;;  %p2243_p0 = scmp.lt.u32.totalorder %s2528_s20, %s2891_s10 }
  0x41   : > { %p2238_p10 = scmp.ne.s32.totalorder %s2528_s20, %s2237_s22  ;;  %p2244_p2 = scmp.lt.u32.totalorder %s2242_s24, %s2237_s22 }
  0x42   : > { %p2246_p7 = scmp.lt.u32.totalorder %s2237_s22, %s2528_s20 }
  0x43   : > { %p2240_p12 = pnand %p2239_p11, %p2238_p10  ;;  %p2245_p3 = por %p2244_p2, %p2243_p0 }
  0x45   : > { %p2241_p13 = pneg %p2240_p12  ;;  %p2247_p4 = por %p2246_p7, %p2245_p3 }
  0x47   : > { %p2248_p5 = pnand %p2247_p4, %p2241_p13 }
  0x49   : > { %2251 = shalt.err (!%p2248_p5)
}
  0x4a   : > { %s2252_s19 = scalar_lea.vmem %s2534_s18, 16  ;;  %s2338_s23 = smov [#allocation6]  }
  0x4b   : > { %p2253_p1 = scmp.ne.s32.totalorder %s2534_s18, %s2252_s19  ;;  %s2257_s16 = sshll.u32 %s2338_s23, 4  ;;  %s2258_s16 = int_to_ptr.vmem [resolvable:$false] %s2257_s16 }
  0x4c   : > { %s2259_s17 = scalar_lea.vmem %s2258_s16, 32  ;;  %p2260_p10 = scmp.lt.s32.totalorder %s2534_s18, %s2258_s16 }
  0x4d   : > { %p2255_p6 = pnand %p2253_p1, %p2239_p11  ;;  %p2261_p12 = scmp.lt.s32.totalorder %s2259_s17, %s2252_s19 }
  0x4f   : > { %p2256_p9 = pneg %p2255_p6  ;;  %p2262_p0 = por %p2261_p12, %p2260_p10 }
  0x51   : > { %p2263_p2 = pnand %p2262_p0, %p2256_p9 }
  0x53   : > { %2266 = shalt.err (!%p2263_p2)
}
  0x54   : > { %2109 = dma.hbm_to_vmem [thread:$0]  (!%p2530_p8), %s2528_s20, 16, %s2534_s18, %s560_s27  }
  0x55   : > { %p2893_p13 = scmp.ne.s32.totalorder %s2883_s0, 0 }
  0x56   : > { %p2894_p11 = scmp.eq.s32.totalorder (!%p2893_p13), %s2460_s28, 0 }
  0x57   : > { %604 = sbr.rel (%p2893_p13) target bundleno = 3255 (0xcb7), region = 88 }
  0x5e   : > { %2310 = dma.done.wait (%p2894_p11), [#allocation4], 16   ;;  %p2895_p3 = pmov %p2894_p11 }
  0x5f   : > { %s610_s22 = sand.u32 1, %s2327_s25   ;;  %p2896_p7 = scmp.ne.s32.totalorder %s2882_s29, 0 }
  0x60   : > { %2312 = vsyncadd (%p2895_p3), [#allocation4], 4294967280  ;;  %s611_s24 = scalar_lea.sflag [#allocation7], %s610_s22  ;;  %s2568_s1 = scalar_lea.vmem [#allocation6], %s610_s22 }
  0x61   : > { %2314 = dma.done.wait (%p2896_p7), %s611_s24, 16  }
  0x62   : > { %2316 = vsyncadd (%p2896_p7), %s611_s24, 4294967280  ;;  %p699_p8 = scmp.lt.s32.totalorder %s2460_s28, 1  ;;  %s2897_s3 = sld [smem:[#allocation19_spill]] }
  0x63   : > { %s2898_s5 = sld [smem:[#allocation20_spill]]  ;;  %p2899_p4 = scmp.ne.s32.totalorder %s2460_s28, 0 }
  0x64   : > { %s2576_s0 = scalar_select %p699_p8, %s2460_s28, 1 }
  0x65   : > { %744 = sbr.rel (%p2899_p4) target bundleno = 432 (0x1b0), region = 100  ;;  %vm749_vm0 = vcmask (!%p2899_p4), 261120   ;;  %vm795_vm1 = vcmask (!%p2899_p4), 189440   ;;  %v2339_v14 = vmov (!%p2899_p4), 0.0   ;;  %s2901_s24 = sld [smem:[#allocation17_spill]] (!%p2899_p4) }
  0x66   : > { %s1963_s20 = sshll.u32 %s2576_s0, 4  ;;  %s717_s26 = scalar_lea.vmem %s2850_s7, %s2576_s0  ;;  %796 = vst.msk [vmem:[#allocation8] sm:$0x3] (!%p2899_p4), %vm795_vm1, %v2339_v14  ;;  %v1923_v24 = vld [vmem:[#allocation3] ss:$0 sm:$0xff] (!%p2899_p4) }
  0x67   : > { %s1966_s23 = sshll.u32 %s2576_s0, 5  ;;  %s733_s25 = scalar_lea.vmem %s2855_s12, %s2576_s0 }
  0x68   : > { %s2586_s19 = scalar_lea.vmem %s2897_s3, %s1963_s20  ;;  %s2608_s3 = scalar_lea.vmem %s2852_s9, %s1963_s20 }
  0x69   : > { %s2591_s17 = scalar_lea.vmem %s2898_s5, %s1963_s20  ;;  %s2618_s2 = scalar_lea.vmem %s2854_s11, %s1966_s23 }
  0x6a   : > { %s736_s18 = scalar_lea.vmem %s2856_s13, %s2576_s0  ;;  %s739_s27 = scalar_lea.vmem %s2857_s14, %s2576_s0 }
  0x6b   : > { %s2900_s5 = sld [smem:[#allocation16_spill]] (!%p2899_p4)  ;;  %v1922_v22 = vld [vmem:[%s2901_s24] ss:$0 sm:$0xff] (!%p2899_p4) }
  0x71   : > { %v745_v0 = vld [vmem:[%s2900_s5] sm:$0xff]  ;;  %v746_v1 = vld [vmem:[%s2900_s5 + $0x8] sm:$0xff] }
  0x72   : > { %v750_v2 = vsel %vm749_vm0, %v745_v0, 0.0  ;;  %v753_v3 = vsel %vm749_vm0, %v746_v1, 0.0 }
  0x73   : > { %751 = vadd.xlane.f32.xlu0 %v750_v2 }
  0x77   : > { %754 = vadd.xlane.f32.xlu0 %v753_v3 }
 0x100   : > { %v752_v4 = vpop.xlane.xlu0 %751 }
 0x101   : > { %v757_v5 = vmul.f32 0.03125, %v752_v4 }
 0x103   : > { %v759_v6 = vsub.f32 %v745_v0, %v757_v5 }
 0x104   : > { %v755_v7 = vpop.xlane.xlu0 %754 }
 0x105   : > { %v758_v8 = vmul.f32 0.03125, %v755_v7  ;;  %v761_v9 = vmul.f32 %v759_v6, %v759_v6 }
 0x107   : > { %v760_v10 = vsub.f32 %v746_v1, %v758_v8  ;;  %v763_v11 = vsel %vm749_vm0, %v761_v9, 0.0 }
 0x108   : > { %764 = vadd.xlane.f32.xlu1 %v763_v11 }
 0x109   : > { %v762_v12 = vmul.f32 %v760_v10, %v760_v10 }
 0x10b   : > { %v766_v13 = vsel %vm749_vm0, %v762_v12, 0.0 }
 0x10c   : > { %767 = vadd.xlane.f32.xlu1 %v766_v13 }
 0x195   : > { %v765_v15 = vpop.xlane.xlu1 %764 }
 0x196   : > { %v769_v16 = vmul.f32 0.03125, %v765_v15 }
 0x198   : > { %v771_v17 = vadd.f32 1e-12, %v769_v16 }
 0x199   : > { %v768_v18 = vpop.xlane.xlu1 %767 }
 0x19a   : > { %2160 = vrsqrt.f32 %v771_v17  ;;  %v770_v19 = vmul.f32 0.03125, %v768_v18 }
 0x19c   : > { %v772_v20 = vadd.f32 1e-12, %v770_v19 }
 0x19e   : > { %2162 = vrsqrt.f32 %v772_v20 }
 0x1a4   : > { %v2161_v21 = vpop.eup %2160 }
 0x1a5   : > { %v775_v23 = vmul.f32 %v2161_v21, %v759_v6 }
 0x1a7   : > { %v783_v25 = vmul.f32 %v1922_v22, %v775_v23 }
 0x1a8   : > { %v2163_v26 = vpop.eup %2162 }
 0x1a9   : > { %v791_v27 = vadd.f32 %v1923_v24, %v783_v25  ;;  %v776_v28 = vmul.f32 %v2163_v26, %v760_v10 }
 0x1ab   : > { %793 = vst.msk [vmem:[#allocation2] sm:$0xff] %vm749_vm0, %v791_v27  ;;  %v784_v29 = vmul.f32 %v1922_v22, %v776_v28 }
 0x1ad   : > { %v792_v30 = vadd.f32 %v1923_v24, %v784_v29 }
 0x1af   : > { %794 = vst.msk [vmem:[#allocation2 + $0x8] sm:$0xff] %vm749_vm0, %v792_v30 }
 0x1b0 PF: > { %v2169_v31 = vld [vmem:[%s2586_s19] sm:$0xff]   ;;  %v2340_v32 = vmov 0.0   ;;  %v2170_v33 = vld [vmem:[%s2586_s19 + $0x8] sm:$0xff]   ;;  %vm2341_vm2 = vmmov 0   ;;  %vm823_vm3 = vcmask 261120   ;;  %s2902_s15 = scalar_lea.vmem %s2847_s4, %s2576_s0  ;;  %s2342_s21 = smov 112  }
 0x1b1   : > { %2000 = vmatprep.subr.bf16.mxu0 %v2340_v32  ;;  %2008 = vmatprep.subr.bf16.mxu1 %v2340_v32  ;;  %v1924_v37 = vld [vmem:[%s2902_s15] ss:$0 sm:$0xff]  ;;  %s2343_s20 = smov 96   ;;  %s2344_s30 = smov 80   ;;  %vm872_vm4 = vcmask 130048   ;;  %vm920_vm5 = vcmask 64512  }
 0x1b2   : > { %2001 = vmatpush3.bf16.msra.mxu0 %v2169_v31  ;;  %2004 = vmatprep.mubr.msk.bf16.mxu0 %vm2341_vm2, %v2340_v32  ;;  %v2651_v34 = vld [vmem:[#allocation2] sm:$0xff]  ;;  %s2345_s16 = smov 64   ;;  %s2346_s22 = smov 48   ;;  %vm938_vm6 = vcmask 1043456   ;;  %vm1558_vm7 = vcmask 523264  }
 0x1b3   : > { %2002 = vmatprep.subr.bf16.mxu0 %v2340_v32  ;;  %2010 = vmatprep.mubr.msk.bf16.mxu1 %vm2341_vm2, %v2340_v32  ;;  %s2347_s29 = smov 16   ;;  %s2903_s24 = scalar_lea.vmem %s2849_s6, %s2576_s0 }
 0x1b4   : > { %p1954_p5 = scmp.ne.s32.totalorder %s2460_s28, 1 }
 0x1b5   : > { %vm2349_vm8 = vmmov (!%p1954_p5), 0   ;;  %vm1658_vm9 = vcmask (!%p1954_p5), 1040384   ;;  %s2906_s23 = sld [smem:[#allocation23_spill]] (!%p1954_p5)  ;;  %vm1727_vm10 = vcmask (!%p1954_p5), 189440  }
 0x1b6   : > { %v2653_v35 = vld [vmem:[#allocation2 + $0x8] sm:$0xff]  ;;  %2003 = vmatpush3.bf16.msra.mxu0 %v2170_v33 }
 0x1b7   : > { %v799_v36 = vpack.c.bf16 %v2653_v35, %v2651_v34  ;;  %2014 = vmatprep.subr.bf16.mxu0 %v2340_v32 }
 0x1b9   : > { %2005 = vmatmul.mubr.msk.bf16.vlgmr.msra.gmra.mrb[0].mxu0 %vm823_vm3, %v799_v36 }
 0x1ba   : > { %2016 = vmatprep.mubr.msk.bf16.mxu0 %vm2341_vm2, %v2340_v32 }
 0x28c   : > { %v861_v38 = vpop.f32.mrb[0].mxu0 }
 0x28d   : > { %v862_v39 = vadd.f32 %v1924_v37, %v861_v38  ;;  %v2006_v40 = vpop.f32.mrb[1].mxu0 }
 0x28e   : > { %v864_v41 = vpop.f32.mrb[2].mxu0 }
 0x28f   : > { %v2669_v42 = vpack.c.bf16 %v862_v39, %v862_v39  ;;  %v865_v43 = vadd.f32 %v1924_v37, %v864_v41  ;;  %v2007_v44 = vpop.f32.mrb[3].mxu0 }
 0x291   : > { %982 = vrot.lane.b32.xlu1 %v2669_v42, %s2342_s21  ;;  %870 = vrot.lane.b32.xlu0 %v2669_v42, %s2343_s20  ;;  %v2673_v45 = vpack.c.bf16 %v865_v43, %v865_v43 }
 0x295   : > { %984 = vrot.lane.b32.xlu0 %v2669_v42, %s2344_s30  ;;  %1100 = vrot.lane.b32.xlu1 %v2673_v45, %s2343_s20 }
 0x299   : > { %1211 = vrot.lane.b32.xlu0 %v2673_v45, %s2344_s30  ;;  %1209 = vrot.lane.b32.xlu1 %v2673_v45, %s2342_s21  ;;  %s2904_s21 = scalar_lea.vmem %s2851_s8, %s2576_s0 }
 0x303   : > { %v871_v46 = vpop.permute.xlu0 %870  ;;  %v983_v49 = vpop.permute.xlu1 %982 }
 0x304   : > { %v877_v47 = vsel %vm872_vm4, %v871_v46, 0 }
 0x305   : > { %2009 = vmatpush3.bf16.xpose.msra.mxu1 %v877_v47 }
 0x306   : > { %2020 = vmatprep.subr.bf16.mxu1 %v2340_v32 }
 0x307   : > { %v985_v48 = vpop.permute.xlu0 %984  ;;  %v1101_v51 = vpop.permute.xlu1 %1100 }
 0x308   : > { %v990_v50 = vsel %vm872_vm4, %v985_v48, 0  ;;  %v1106_v52 = vsel %vm872_vm4, %v1101_v51, 0 }
 0x30b   : > { %v1212_v53 = vpop.permute.xlu0 %1211  ;;  %v1210_v55 = vpop.permute.xlu1 %1209 }
 0x30c   : > { %2011 = vmatmul.mubr.msk.bf16.vlgmr.msra.gmra.mrb[0].mxu1 %vm872_vm4, %v2669_v42  ;;  %v1217_v54 = vsel %vm872_vm4, %v1212_v53, 0 }
 0x30d   : > { %2021 = vmatpush3.bf16.xpose.msra.mxu1 %v990_v50  ;;  %2022 = vmatprep.mubr.msk.bf16.mxu1 %vm2341_vm2, %v2340_v32 }
 0x30e   : > { %2032 = vmatprep.subr.bf16.mxu1 %v2340_v32 }
 0x314   : > { %2023 = vmatmul.mubr.msk.bf16.vlgmr.msra.gmra.mrb[4].mxu1 %vm872_vm4, %v983_v49 }
 0x315   : > { %2033 = vmatpush3.bf16.xpose.msra.mxu1 %v1106_v52  ;;  %2034 = vmatprep.mubr.msk.bf16.mxu1 %vm2341_vm2, %v2340_v32 }
 0x316   : > { %2044 = vmatprep.subr.bf16.mxu1 %v2340_v32 }
 0x31c   : > { %2035 = vmatmul.mubr.msk.bf16.vlgmr.msra.gmra.mrb[8].mxu1 %vm872_vm4, %v2673_v45 }
 0x31d   : > { %2045 = vmatpush3.bf16.xpose.msra.mxu1 %v1217_v54  ;;  %2046 = vmatprep.mubr.msk.bf16.mxu1 %vm2341_vm2, %v2340_v32 }
 0x31e   : > { %2056 = vmatprep.subr.bf16.mxu1 %v2340_v32 }
 0x324   : > { %2047 = vmatmul.mubr.msk.bf16.vlgmr.msra.gmra.mrb[12].mxu1 %vm872_vm4, %v1210_v55 }
 0x325   : > { %2060 = vmatprep.mubr.msk.bf16.mxu1 %vm2341_vm2, %v2340_v32 }
 0x3df   : > { %v913_v56 = vpop.f32.mrb[0].mxu1 }
 0x3e0   : > { %v919_v57 = vmul.f32 0.25, %v913_v56  ;;  %v2012_v58 = vpop.f32.mrb[1].mxu1 }
 0x3e1   : > { %v916_v59 = vpop.f32.mrb[2].mxu1 }
 0x3e2   : > { %v2013_v60 = vpop.f32.mrb[3].mxu1  ;;  %v921_v61 = vsel %vm920_vm5, %v919_v57, -inf }
 0x3e3   : > { %922 = vmax.xlane.f32.xlu0 %v921_v61 }
 0x3e7   : > { %v1026_v62 = vpop.f32.mrb[4].mxu1 }
 0x3e8   : > { %v1032_v63 = vmul.f32 0.25, %v1026_v62  ;;  %v2024_v0 = vpop.f32.mrb[5].mxu1 }
 0x3e9   : > { %v1029_v1 = vpop.f32.mrb[6].mxu1 }
 0x3ea   : > { %v2025_v2 = vpop.f32.mrb[7].mxu1  ;;  %v1033_v3 = vsel %vm920_vm5, %v1032_v63, -inf }
 0x3eb   : > { %1034 = vmax.xlane.f32.xlu1 %v1033_v3 }
 0x3ef   : > { %v1142_v4 = vpop.f32.mrb[8].mxu1 }
 0x3f0   : > { %v1148_v5 = vmul.f32 0.25, %v1142_v4  ;;  %v2036_v6 = vpop.f32.mrb[9].mxu1 }
 0x3f1   : > { %v1145_v7 = vpop.f32.mrb[10].mxu1 }
 0x3f2   : > { %v2037_v8 = vpop.f32.mrb[11].mxu1  ;;  %v1149_v9 = vsel %vm920_vm5, %v1148_v5, -inf }
 0x3f3   : > { %1150 = vmax.xlane.f32.xlu0 %v1149_v9  ;;  %v2172_v8 = vld [vmem:[%s2591_s17 + $0x8] sm:$0xff]  }
 0x3f7   : > { %v1253_v10 = vpop.f32.mrb[12].mxu1 }
 0x3f8   : > { %v1259_v11 = vmul.f32 0.25, %v1253_v10  ;;  %v2048_v12 = vpop.f32.mrb[13].mxu1 }
 0x3f9   : > { %v1256_v13 = vpop.f32.mrb[14].mxu1 }
 0x3fa   : > { %v2049_v14 = vpop.f32.mrb[15].mxu1  ;;  %v1260_v15 = vsel %vm920_vm5, %v1259_v11, -inf }
 0x3fb   : > { %1261 = vmax.xlane.f32.xlu0 %v1260_v15 }
 0x470   : > { %v923_v16 = vpop.xlane.xlu0 %922 }
 0x471   : > { %v924_v17 = vsub.f32 %v919_v57, %v923_v16 }
 0x473   : > { %v925_v18 = vmul.f32 1.442695, %v924_v17 }
 0x475   : > { %2179 = vpow2.f32 %v925_v18 }
 0x478   : > { %v1035_v19 = vpop.xlane.xlu1 %1034 }
 0x479   : > { %v1036_v20 = vsub.f32 %v1032_v63, %v1035_v19  ;;  %v2171_v63 = vld [vmem:[%s2591_s17] sm:$0xff]  }
 0x47a   : > { %2057 = vmatpush3.bf16.msra.mxu1 %v2171_v63 }
 0x47b   : > { %v1037_v21 = vmul.f32 1.442695, %v1036_v20  ;;  %2058 = vmatprep.subr.bf16.mxu1 %v2340_v32 }
 0x47d   : > { %2181 = vpow2.f32 %v1037_v21 }
 0x47e   : > { %2059 = vmatpush3.bf16.msra.mxu1 %v2172_v8 }
 0x47f   : > { %v2180_v22 = vpop.eup %2179  ;;  %2072 = vmatprep.subr.bf16.mxu1 %v2340_v32 }
 0x480   : > { %v927_v23 = vsel %vm920_vm5, %v2180_v22, 0.0  ;;  %v1151_v24 = vpop.xlane.xlu0 %1150 }
 0x481   : > { %928 = vadd.xlane.f32.xlu1 %v927_v23  ;;  %v1152_v33 = vsub.f32 %v1148_v5, %v1151_v24  ;;  %v1936_v24 = vld [vmem:[%s2903_s24] ss:$0 sm:$0xff] }
 0x483   : > { %v1153_v36 = vmul.f32 1.442695, %v1152_v33 }
 0x487   : > { %v2182_v25 = vpop.eup %2181 }
 0x488   : > { %v1262_v26 = vpop.xlane.xlu0 %1261  ;;  %v1039_v27 = vsel %vm920_vm5, %v2182_v25, 0.0 }
 0x489   : > { %v1263_v28 = vsub.f32 %v1259_v11, %v1262_v26  ;;  %1040 = vadd.xlane.f32.xlu0 %v1039_v27 }
 0x48b   : > { %v1264_v29 = vmul.f32 1.442695, %v1263_v28 }
 0x48d   : > { %2183 = vpow2.f32 %v1264_v29 }
 0x48e   : > { %2185 = vpow2.f32 %v1153_v36 }
 0x492   : > { %933 = vrot.lane.b32.xlu1 %v2669_v42, %s2345_s16 }
 0x497   : > { %v2184_v30 = vpop.eup %2183 }
 0x498   : > { %v1266_v31 = vsel %vm920_vm5, %v2184_v30, 0.0  ;;  %v2186_v37 = vpop.eup %2185 }
 0x499   : > { %1267 = vadd.xlane.f32.xlu0 %v1266_v31  ;;  %v1155_v38 = vsel %vm920_vm5, %v2186_v37, 0.0 }
 0x4af   : > { %1045 = vrot.lane.b32.xlu0 %v2669_v42, %s2346_s22 }
 0x4b6   : > { %1156 = vadd.xlane.f32.xlu1 %v1155_v38 }
 0x4c7   : > { %1161 = vrot.lane.b32.xlu1 %v2673_v45, %s2345_s16 }
 0x4cb   : > { %1272 = vrot.lane.b32.xlu1 %v2673_v45, %s2346_s22  ;;  %s2905_s22 = sld [smem:[#allocation22_spill]] (!%p1954_p5) }
 0x50e   : > { %v929_v39 = vpop.xlane.xlu1 %928 }
 0x50f   : > { %2187 = vrcp.f32 %v929_v39 }
 0x512   : > { %v934_v40 = vpop.permute.xlu1 %933 }
 0x513   : > { %v940_v41 = vsel %vm938_vm6, %v934_v40, 0 }
 0x514   : > { %2015 = vmatpush3.bf16.msra.mxu0 %v940_v41 }
 0x515   : > { %2026 = vmatprep.subr.bf16.mxu0 %v2340_v32 }
 0x516   : > { %v1041_v44 = vpop.xlane.xlu0 %1040 }
 0x517   : > { %2189 = vrcp.f32 %v1041_v44 }
 0x519   : > { %v2188_v43 = vpop.eup %2187 }
 0x51a   : > { %v931_v42 = vmul.f32 %v2188_v43, %v2180_v22 }
 0x51c   : > { %v932_v46 = vpack.c.bf16 %v931_v42, %v931_v42 }
 0x51e   : > { %2017 = vmatmul.mubr.msk.bf16.vlgmr.msra.gmra.mrb[4].mxu0 %vm920_vm5, %v932_v46 }
 0x51f   : > { %2028 = vmatprep.mubr.msk.bf16.mxu0 %vm2341_vm2, %v2340_v32 }
 0x521   : > { %v2190_v45 = vpop.eup %2189 }
 0x522   : > { %v1043_v48 = vmul.f32 %v2190_v45, %v2182_v25 }
 0x524   : > { %v1044_v51 = vpack.c.bf16 %v1043_v48, %v1043_v48 }
 0x526   : > { %v1268_v47 = vpop.xlane.xlu0 %1267 }
 0x52a   : > { %v1046_v49 = vpop.permute.xlu0 %1045 }
 0x52b   : > { %v1051_v50 = vsel %vm938_vm6, %v1046_v49, 0 }
 0x52c   : > { %2027 = vmatpush3.bf16.msra.mxu0 %v1051_v50 }
 0x52d   : > { %2038 = vmatprep.subr.bf16.mxu0 %v2340_v32 }
 0x52f   : > { %2029 = vmatmul.mubr.msk.bf16.vlgmr.msra.gmra.mrb[8].mxu0 %vm920_vm5, %v1044_v51 }
 0x530   : > { %2040 = vmatprep.mubr.msk.bf16.mxu0 %vm2341_vm2, %v2340_v32 }
 0x543   : > { %v1157_v52 = vpop.xlane.xlu1 %1156 }
 0x544   : > { %2191 = vrcp.f32 %v1157_v52 }
 0x545   : > { %2193 = vrcp.f32 %v1268_v47  ;;  %v2174_v47 = vld [vmem:[%s2608_s3 + $0x8] sm:$0xff]  }
 0x547   : > { %v1162_v53 = vpop.permute.xlu1 %1161 }
 0x548   : > { %v1167_v54 = vsel %vm938_vm6, %v1162_v53, 0 }
 0x549   : > { %2039 = vmatpush3.bf16.msra.mxu0 %v1167_v54 }
 0x54a   : > { %2050 = vmatprep.subr.bf16.mxu0 %v2340_v32 }
 0x54b   : > { %v1273_v57 = vpop.permute.xlu1 %1272 }
 0x54c   : > { %v1278_v60 = vsel %vm938_vm6, %v1273_v57, 0 }
 0x54e   : > { %v2192_v55 = vpop.eup %2191 }
 0x54f   : > { %v1159_v56 = vmul.f32 %v2192_v55, %v2186_v37  ;;  %v2194_v59 = vpop.eup %2193  ;;  %v1940_v55 = vld [vmem:[%s717_s26] ss:$0 sm:$0xff] }
 0x550   : > { %v1270_v61 = vmul.f32 %v2194_v59, %v2184_v30 }
 0x551   : > { %v1160_v58 = vpack.c.bf16 %v1159_v56, %v1159_v56 }
 0x552   : > { %v1271_v62 = vpack.c.bf16 %v1270_v61, %v1270_v61 }
 0x553   : > { %2041 = vmatmul.mubr.msk.bf16.vlgmr.msra.gmra.mrb[12].mxu0 %vm920_vm5, %v1160_v58 }
 0x554   : > { %2051 = vmatpush3.bf16.msra.mxu0 %v1278_v60  ;;  %2052 = vmatprep.mubr.msk.bf16.mxu0 %vm2341_vm2, %v2340_v32  ;;  %v1941_v60 = vld [vmem:[%s2904_s21] ss:$0 sm:$0xff] }
 0x555   : > { %2064 = vmatprep.subr.bf16.mxu0 %v2340_v32 }
 0x55b   : > { %2053 = vmatmul.mubr.msk.bf16.vlgmr.msra.gmra.mrb[16].mxu0 %vm920_vm5, %v1271_v62 }
 0x55c   : > { %2068 = vmatprep.mubr.msk.bf16.mxu0 %vm2341_vm2, %v2340_v32 }
 0x5f1   : > { %v976_v0 = vpop.f32.mrb[4].mxu0 }
 0x5f2   : > { %v2018_v1 = vpop.f32.mrb[5].mxu0 }
 0x5f3   : > { %v979_v2 = vpop.f32.mrb[6].mxu0  ;;  %v2175_v1 = vld [vmem:[%s2618_s2] sm:$0xff]  }
 0x5f4   : > { %v2019_v3 = vpop.f32.mrb[7].mxu0  ;;  %v2176_v2 = vld [vmem:[%s2618_s2 + $0x8] sm:$0xff]  }
 0x5f5   : > { %v2177_v3 = vld [vmem:[%s2618_s2 + $0x10] sm:$0xff]  }
 0x602   : > { %v1087_v4 = vpop.f32.mrb[8].mxu0 }
 0x603   : > { %v2030_v5 = vpop.f32.mrb[9].mxu0 }
 0x604   : > { %v1090_v6 = vpop.f32.mrb[10].mxu0  ;;  %v1942_v5 = vld [vmem:[%s2568_s1] ss:$0 sm:$0xff] }
 0x605   : > { %v2031_v7 = vpop.f32.mrb[11].mxu0 }
 0x626   : > { %v1203_v9 = vpop.f32.mrb[12].mxu0 }
 0x627   : > { %v2042_v10 = vpop.f32.mrb[13].mxu0 }
 0x628   : > { %v1206_v11 = vpop.f32.mrb[14].mxu0 }
 0x629   : > { %v2043_v12 = vpop.f32.mrb[15].mxu0 }
 0x62e   : > { %v1314_v13 = vpop.f32.mrb[16].mxu0 }
 0x62f   : > { %v2164_v14 = vpack.i.bf16 %v1314_v13, %v1087_v4  ;;  %v2054_v15 = vpop.f32.mrb[17].mxu0  ;;  %v2178_v4 = vld [vmem:[%s2618_s2 + $0x18] sm:$0xff]  }
 0x630   : > { %v1317_v16 = vpop.f32.mrb[18].mxu0 }
 0x631   : > { %2165 = vrot.lane.b32.xlu0 %v2164_v14, %s2347_s29  ;;  %v2055_v17 = vpop.f32.mrb[19].mxu0 }
 0x6a3   : > { %v2166_v18 = vpop.permute.xlu0 %2165 }
 0x6a4   : > { %v2168_v19 = vunpack.i.h.bf16 %v2166_v18  ;;  %v2167_v20 = vunpack.i.l.bf16 %v2166_v18 }
 0x6a6   : > { %v1324_v21 = vsel %vm872_vm4, %v1203_v9, %v2168_v19  ;;  %v1097_v22 = vsel %vm872_vm4, %v976_v0, %v2167_v20 }
 0x6a7   : > { %v1325_v23 = vpack.c.bf16 %v1324_v21, %v1097_v22  ;;  %v1946_v22 = vld [vmem:[%s733_s25] ss:$0 sm:$0xff] }
 0x6a9   : > { %2061 = vmatmul.mubr.msk.bf16.vlgmr.msra.gmra.mrb[16].mxu1 %vm823_vm3, %v1325_v23 }
 0x6aa   : > { %2080 = vmatprep.mubr.msk.bf16.mxu1 %vm2341_vm2, %v2340_v32  ;;  %2073 = vmatpush3.bf16.msra.mxu1 %v2175_v1 }
 0x6ab   : > { %2074 = vmatprep.subr.bf16.mxu1 %v2340_v32 }
 0x6ae   : > { %2075 = vmatpush3.bf16.msra.mxu1 %v2176_v2  ;;  %v1955_v2 = vld [vmem:[%s2906_s23] ss:$0 sm:$0xff] (!%p1954_p5) }
 0x6af   : > { %2076 = vmatprep.subr.bf16.mxu1 %v2340_v32 }
 0x6b2   : > { %2077 = vmatpush3.bf16.msra.mxu1 %v2177_v3 }
 0x6b3   : > { %2078 = vmatprep.subr.bf16.mxu1 %v2340_v32 }
 0x6b6   : > { %2079 = vmatpush3.bf16.msra.mxu1 %v2178_v4 }
 0x77c   : > { %v1386_v25 = vpop.f32.mrb[16].mxu1 }
 0x77d   : > { %v1387_v26 = vadd.f32 %v1936_v24, %v1386_v25  ;;  %v2062_v27 = vpop.f32.mrb[17].mxu1 }
 0x77e   : > { %v1389_v28 = vpop.f32.mrb[18].mxu1 }
 0x77f   : > { %v1390_v29 = vadd.f32 %v1936_v24, %v1389_v28  ;;  %v2063_v30 = vpop.f32.mrb[19].mxu1  ;;  %v1393_v31 = vadd.f32 %v1387_v26, %v2651_v34 }
 0x781   : > { %v1397_v33 = vsel %vm823_vm3, %v1393_v31, 0.0  ;;  %v1394_v36 = vadd.f32 %v1390_v29, %v2653_v35  ;;  %v2173_v35 = vld [vmem:[%s2608_s3] sm:$0xff]  }
 0x782   : > { %1398 = vadd.xlane.f32.xlu1 %v1397_v33  ;;  %2065 = vmatpush3.bf16.msra.mxu0 %v2173_v35 }
 0x783   : > { %v1400_v37 = vsel %vm823_vm3, %v1394_v36, 0.0  ;;  %2066 = vmatprep.subr.bf16.mxu0 %v2340_v32 }
 0x784   : > { %1401 = vadd.xlane.f32.xlu0 %v1400_v37 }
 0x786   : > { %2067 = vmatpush3.bf16.msra.mxu0 %v2174_v47 }
 0x80f   : > { %v1399_v38 = vpop.xlane.xlu1 %1398 }
 0x810   : > { %v1404_v39 = vmul.f32 0.03125, %v1399_v38 }
 0x811   : > { %v1402_v40 = vpop.xlane.xlu0 %1401 }
 0x812   : > { %v1406_v41 = vsub.f32 %v1393_v31, %v1404_v39  ;;  %v1405_v43 = vmul.f32 0.03125, %v1402_v40 }
 0x814   : > { %v1407_v44 = vsub.f32 %v1394_v36, %v1405_v43  ;;  %v1408_v42 = vmul.f32 %v1406_v41, %v1406_v41 }
 0x816   : > { %v1410_v46 = vsel %vm823_vm3, %v1408_v42, 0.0  ;;  %v1409_v34 = vmul.f32 %v1407_v44, %v1407_v44 }
 0x817   : > { %1411 = vadd.xlane.f32.xlu0 %v1410_v46 }
 0x818   : > { %v1413_v45 = vsel %vm823_vm3, %v1409_v34, 0.0 }
 0x819   : > { %1414 = vadd.xlane.f32.xlu1 %v1413_v45 }
 0x8a4   : > { %v1412_v48 = vpop.xlane.xlu0 %1411 }
 0x8a5   : > { %v1416_v49 = vmul.f32 0.03125, %v1412_v48 }
 0x8a6   : > { %v1415_v50 = vpop.xlane.xlu1 %1414 }
 0x8a7   : > { %v1418_v51 = vadd.f32 1e-12, %v1416_v49  ;;  %v1417_v52 = vmul.f32 0.03125, %v1415_v50 }
 0x8a9   : > { %2195 = vrsqrt.f32 %v1418_v51  ;;  %v1419_v53 = vadd.f32 1e-12, %v1417_v52  ;;  %v1952_v51 = vld [vmem:[%s736_s18] ss:$0 sm:$0xff] }
 0x8ab   : > { %2197 = vrsqrt.f32 %v1419_v53 }
 0x8b3   : > { %v2196_v54 = vpop.eup %2195 }
 0x8b4   : > { %v1422_v56 = vmul.f32 %v2196_v54, %v1406_v41  ;;  %v1953_v54 = vld [vmem:[%s739_s27] ss:$0 sm:$0xff] }
 0x8b5   : > { %v2198_v57 = vpop.eup %2197 }
 0x8b6   : > { %v1430_v58 = vmul.f32 %v1940_v55, %v1422_v56  ;;  %v1423_v59 = vmul.f32 %v2198_v57, %v1407_v44 }
 0x8b8   : > { %v1431_v61 = vmul.f32 %v1940_v55, %v1423_v59  ;;  %v1438_v62 = vadd.f32 %v1941_v60, %v1430_v58 }
 0x8ba   : > { %v1439_v63 = vadd.f32 %v1941_v60, %v1431_v61  ;;  %v2207_v60 = vld [vmem:[%s2905_s22] sm:$0xff] (!%p1954_p5)   ;;  %v2348_v61 = vmov (!%p1954_p5), 0.0  }
 0x8bb   : > { %2084 = vmatprep.subr.bf16.mxu0 (!%p1954_p5), %v2348_v61 }
 0x8bc   : > { %v1440_v0 = vpack.c.bf16 %v1439_v63, %v1438_v62 }
 0x8be   : > { %2069 = vmatmul.mubr.msk.bf16.vlgmr.msra.gmra.mrb[20].mxu0 %vm823_vm3, %v1440_v0 }
 0x8bf   : > { %2085 = vmatpush3.bf16.msra.mxu0 (!%p1954_p5), %v2207_v60  ;;  %2088 = vmatprep.mubr.msk.bf16.mxu0 (!%p1954_p5), %vm2349_vm8, %v2348_v61 }
 0x8c0   : > { %2086 = vmatprep.subr.bf16.mxu0 (!%p1954_p5), %v2348_v61 }
 0x991   : > { %v1501_v6 = vpop.f32.mrb[20].mxu0 }
 0x992   : > { %v1502_v7 = vadd.f32 %v1942_v5, %v1501_v6  ;;  %v2070_v8 = vpop.f32.mrb[21].mxu0 }
 0x993   : > { %v1504_v9 = vpop.f32.mrb[22].mxu0 }
 0x994   : > { %v1510_v10 = vmul.f32 0.70710677, %v1502_v7  ;;  %v1505_v11 = vadd.f32 %v1942_v5, %v1504_v9  ;;  %v2071_v12 = vpop.f32.mrb[23].mxu0  ;;  %v1508_v17 = vmul.f32 0.5, %v1502_v7 }
 0x996   : > { %2199 = verf.f32 %v1510_v10  ;;  %v1511_v13 = vmul.f32 0.70710677, %v1505_v11  ;;  %v1509_v18 = vmul.f32 0.5, %v1505_v11 }
 0x998   : > { %2201 = verf.f32 %v1511_v13 }
 0x9a0   : > { %v2200_v14 = vpop.eup %2199 }
 0x9a1   : > { %v1514_v15 = vadd.f32 1.0, %v2200_v14 }
 0x9a2   : > { %v2202_v16 = vpop.eup %2201 }
 0x9a3   : > { %v1515_v32 = vadd.f32 1.0, %v2202_v16  ;;  %v1516_v19 = vmul.f32 %v1514_v15, %v1508_v17 }
 0x9a5   : > { %v1517_v20 = vmul.f32 %v1515_v32, %v1509_v18 }
 0x9a7   : > { %v1518_v21 = vpack.c.bf16 %v1517_v20, %v1516_v19 }
 0x9a9   : > { %2081 = vmatmul.mubr.msk.bf16.vlgmr.msra.gmra.mrb[20].mxu1 %vm1558_vm7, %v1518_v21 }
 0xa7c   : > { %v1596_v23 = vpop.f32.mrb[20].mxu1 }
 0xa7d   : > { %v1597_v24 = vadd.f32 %v1946_v22, %v1596_v23  ;;  %v2082_v25 = vpop.f32.mrb[21].mxu1 }
 0xa7e   : > { %v1599_v26 = vpop.f32.mrb[22].mxu1 }
 0xa7f   : > { %v1600_v27 = vadd.f32 %v1946_v22, %v1599_v26  ;;  %v2083_v28 = vpop.f32.mrb[23].mxu1  ;;  %v1603_v29 = vadd.f32 %v1597_v24, %v1438_v62  ;;  %v2208_v62 = vld [vmem:[%s2905_s22 + $0x8] sm:$0xff] (!%p1954_p5)  }
 0xa80   : > { %2087 = vmatpush3.bf16.msra.mxu0 (!%p1954_p5), %v2208_v62 }
 0xa81   : > { %v1607_v30 = vsel %vm823_vm3, %v1603_v29, 0.0  ;;  %v1604_v31 = vadd.f32 %v1600_v27, %v1439_v63 }
 0xa82   : > { %1608 = vadd.xlane.f32.xlu0 %v1607_v30 }
 0xa83   : > { %v1610_v33 = vsel %vm823_vm3, %v1604_v31, 0.0 }
 0xa84   : > { %1611 = vadd.xlane.f32.xlu1 %v1610_v33 }
 0xb0f   : > { %v1609_v36 = vpop.xlane.xlu0 %1608 }
 0xb10   : > { %v1613_v37 = vmul.f32 0.03125, %v1609_v36 }
 0xb11   : > { %v1612_v38 = vpop.xlane.xlu1 %1611 }
 0xb12   : > { %v1615_v39 = vsub.f32 %v1603_v29, %v1613_v37  ;;  %v1614_v40 = vmul.f32 0.03125, %v1612_v38 }
 0xb14   : > { %v1616_v41 = vsub.f32 %v1604_v31, %v1614_v40  ;;  %v1617_v43 = vmul.f32 %v1615_v39, %v1615_v39 }
 0xb16   : > { %v1619_v44 = vsel %vm823_vm3, %v1617_v43, 0.0  ;;  %v1618_v42 = vmul.f32 %v1616_v41, %v1616_v41 }
 0xb17   : > { %1620 = vadd.xlane.f32.xlu0 %v1619_v44 }
 0xb18   : > { %v1622_v46 = vsel %vm823_vm3, %v1618_v42, 0.0 }
 0xb19   : > { %1623 = vadd.xlane.f32.xlu1 %v1622_v46 }
 0xba4   : > { %v1621_v34 = vpop.xlane.xlu0 %1620 }
 0xba5   : > { %v1625_v45 = vmul.f32 0.03125, %v1621_v34 }
 0xba6   : > { %v1624_v35 = vpop.xlane.xlu1 %1623 }
 0xba7   : > { %v1627_v47 = vadd.f32 1e-12, %v1625_v45  ;;  %v1626_v48 = vmul.f32 0.03125, %v1624_v35 }
 0xba9   : > { %2203 = vrsqrt.f32 %v1627_v47  ;;  %v1628_v49 = vadd.f32 1e-12, %v1626_v48 }
 0xbab   : > { %2205 = vrsqrt.f32 %v1628_v49 }
 0xbb3   : > { %v2204_v50 = vpop.eup %2203 }
 0xbb4   : > { %v1631_v52 = vmul.f32 %v2204_v50, %v1615_v39 }
 0xbb5   : > { %v2206_v53 = vpop.eup %2205 }
 0xbb6   : > { %v1639_v55 = vmul.f32 %v1952_v51, %v1631_v52  ;;  %v1632_v56 = vmul.f32 %v2206_v53, %v1616_v41  ;;  %1654 = sbr.rel (%p1954_p5) target bundleno = 3224 (0xc98), region = 104 }
 0xbb8   : > { %v1647_v57 = vadd.f32 %v1953_v54, %v1639_v55  ;;  %v1640_v58 = vmul.f32 %v1952_v51, %v1632_v56 }
 0xbba   : > { %1649 = vst.msk [vmem:[#allocation2] sm:$0xff] %vm823_vm3, %v1647_v57  ;;  %v1648_v59 = vadd.f32 %v1953_v54, %v1640_v58 }
 0xbbc   : > { %1650 = vst.msk [vmem:[#allocation2 + $0x8] sm:$0xff] %vm823_vm3, %v1648_v59  ;;  %v1656_v63 = vrot.slane (!%p1954_p5), %v1648_v59, 7 }
 0xbbe   : > { %v1659_v0 = vsel %vm1658_vm9, %v1647_v57, %v1656_v63 }
 0xbbf   : > { %v1660_v1 = vpack.c.bf16 %v1659_v0, %v1659_v0 }
 0xbc1   : > { %2089 = vmatmul.mubr.msk.bf16.vlgmr.msra.gmra.mrb[0].mxu0 %vm823_vm3, %v1660_v1 }
 0xc94   : > { %v1721_v3 = vpop.f32.mrb[0].mxu0 }
 0xc95   : > { %v1722_v4 = vadd.f32 %v1955_v2, %v1721_v3  ;;  %v2090_v5 = vpop.f32.mrb[1].mxu0 }
 0xc96   : > { %v1724_v6 = vpop.f32.mrb[2].mxu0 }
 0xc97   : > { %1728 = vst.msk [vmem:[#allocation8] sm:$0x3] %vm1727_vm10, %v1722_v4  ;;  %v2091_v7 = vpop.f32.mrb[3].mxu0 }
 0xc98 PF: > { %p2113_p1 = scmp.eq.s32.totalorder %s2460_s28, 1  ;;  %s2350_s24 = smov [#allocation8]  }
 0xc99   : > { %s1736_s19 = sshll.u32 %s2350_s24, 4  ;;  %s1737_s19 = int_to_ptr.vmem [resolvable:$true] %s1736_s19 }
 0xc9a   : > { %s2267_s10 = scalar_lea.vmem %s1737_s19, 32  ;;  %p2274_p12 = scmp.lt.s32.totalorder %s1737_s19, %s1737_s19 }
 0xc9b   : > { %p2268_p6 = scmp.ne.s32.totalorder %s1737_s19, %s2267_s10  ;;  %p2275_p0 = scmp.lt.s32.totalorder %s2267_s10, %s2267_s10 }
 0xc9d   : > { %p2269_p9 = pnand %p2268_p6, %p2113_p1  ;;  %p2276_p2 = por %p2275_p0, %p2274_p12 }
 0xc9f   : > { %p2270_p10 = pneg %p2269_p9 }
 0xca1   : > { %p2277_p13 = pnand %p2276_p2, %p2270_p10 }
 0xca3   : > { %2280 = shalt.err (!%p2277_p13)
}
 0xca4   : > { %s2907_s21 = sld [smem:[#allocation24_spill]] }
 0xcaa   : > { %s2281_s2 = scalar_lea.hbm %s2907_s21, 32 }
 0xcab   : > { %p2282_p11 = scmp.ne.s32.totalorder %s2907_s21, %s2281_s2  ;;  %p2287_p8 = scmp.lt.u32.totalorder %s2281_s2, %s2907_s21 }
 0xcad   : > { %p2283_p3 = pnand %p2282_p11, %p2113_p1 }
 0xcaf   : > { %p2284_p7 = pneg %p2283_p3 }
 0xcb1   : > { %p2289_p4 = pnand %p2287_p8, %p2284_p7 }
 0xcb3   : > { %2292 = shalt.err (!%p2289_p4)
}
 0xcb4   : > { %2099 = dma.vmem_to_hbm [thread:$0]  (%p2113_p1), %s1737_s19, 32, %s2907_s21, [#allocation5]  }
 0xcb5   : > { %2318 = dma.done.wait (%p2113_p1), [#allocation5], 32  }
 0xcb6   : > { %2320 = vsyncadd (%p2113_p1), [#allocation5], 4294967264 }
 0xcb7 PF: > { %s2908_s27 = sld [smem:[#allocation14_spill]]  ;;  %s2909_s24 = sld [smem:[#allocation12_spill]] }
 0xcb8   : > { %s2910_s25 = sld [smem:[#allocation13_spill]]  ;;  %s2911_s26 = sld [smem:[#allocation15_spill]] }
 0xcbd   : > { %p29_p5 = scmp.ge.s32.totalorder %s2908_s27, 4  }
 0xcbf   :  { %31 = sbr.rel (!%p29_p5) target bundleno = 15 (0xf), region = 171 }
 0xcc6   :  { %1749 = vsyncpa [#allocation4], 1 }
 0xcc7   :  { %1751 = vsyncpa [#allocation4 + $0x1], 1 }
 0xcc8   :  { %1752 = vsyncpa [#allocation7], 1 }
 0xcc9   :  { %1754 = vsyncpa [#allocation7 + $0x1], 1 }
 0xcca   :  { %1755 = vsyncpa [#allocation5], 1 }
 0xccb   :  { %1757 = vsyncpa [#allocation5 + $0x1], 1 }

</bundles_post_ra>
